<compile_context>
chip_gen: v7x
topology: tpu7x:2x2x1
jax: 0.10.0
libtpu: 0.0.40
codegen_flags: <defaults>
</compile_context>

<pallas_src>
import jax
import jax.numpy as jnp
import numpy as np
from jax import lax
from jax.experimental import pallas as pl
from jax.experimental.pallas import tpu as pltpu


def _round_up(x, m):
    return ((x + m - 1) // m) * m


def _pick_vocab_tile(v_pad):
    # v_pad is always a multiple of 128.
    for t in (2048, 1024, 512, 256, 128):
        if v_pad % t == 0:
            return t
    return v_pad


# --------------------------------------------------------------------------
# Kernel A: encoder projection (hoisted out of the per-step path).
# --------------------------------------------------------------------------
def _enc_proj_kernel(enc_ref, we_ref, battn_ref, out_ref):
    B, T, EH2 = enc_ref.shape
    A = we_ref.shape[1]
    e = jnp.dot(enc_ref[...].reshape(B * T, EH2), we_ref[...],
                preferred_element_type=jnp.float32)
    out_ref[...] = e.reshape(B, T, A) + battn_ref[...][None, :, :]


# --------------------------------------------------------------------------
# Kernel B: one decode step (attention + fused LSTM GEMM + fc_out features).
# --------------------------------------------------------------------------
def _decoder_state_kernel(xid_ref, emb_hbm_ref, enc_ref, eproj_ref, h_ref, c_ref,
                          wh_ref, vattn_ref, wlstm_ref, blstm_ref,
                          hout_ref, cout_ref, feats_ref,
                          emb_vmem, emb_sem):
    B, Hp = h_ref.shape
    K2p = feats_ref.shape[1]
    f32 = jnp.float32
    bf16 = jnp.bfloat16

    # ---- embedding gather: per-row DMA from HBM, indexed by SMEM token ids ----
    copies = [
        pltpu.make_async_copy(
            emb_hbm_ref.at[pl.ds(xid_ref[b], 1), :],   # one (1, E) row of the table
            emb_vmem.at[pl.ds(b, 1), :],
            emb_sem.at[b])
        for b in range(B)
    ]
    for cp in copies:
        cp.start()                                     # overlap gather with attention

    h = h_ref[...]
    c = c_ref[...]
    enc = enc_ref[...].astype(f32)                     # elementwise math in f32

    # ---- additive attention (enc projection precomputed once per sequence) ----
    h_proj = jnp.dot(h.astype(bf16), wh_ref[...],
                     preferred_element_type=f32)                       # (B, A)
    energy = jnp.tanh(eproj_ref[...] + h_proj[:, None, :])             # (B, T, A)
    score = jnp.sum(energy * vattn_ref[...][None, :, :], axis=-1)      # (B, T)
    m = jnp.max(score, axis=-1, keepdims=True)
    p = jnp.exp(score - m)
    w = p * pl.reciprocal(jnp.sum(p, axis=-1, keepdims=True), approx=True)
    ctx = jnp.sum(w[:, :, None] * enc, axis=1)                         # (B, EH2)

    # ---- finish the embedding gather; dropout(p=0) == identity ----
    for cp in copies:
        cp.wait()
    emb = emb_vmem[...]                                                # (B, E) f32

    # ---- single LSTM step: one fused GEMM over [ctx | emb | h] ----
    xcat = jnp.concatenate([ctx, emb, h], axis=1).astype(bf16)
    gates = jnp.dot(xcat, wlstm_ref[...],
                    preferred_element_type=f32) + blstm_ref[...]       # (B, 4*Hp)
    i_g = jax.nn.sigmoid(gates[:, 0 * Hp:1 * Hp])
    f_g = jax.nn.sigmoid(gates[:, 1 * Hp:2 * Hp])
    g_g = jnp.tanh(gates[:, 2 * Hp:3 * Hp])
    o_g = jax.nn.sigmoid(gates[:, 3 * Hp:4 * Hp])
    c_new = f_g * c + i_g * g_g
    h_new = o_g * jnp.tanh(c_new)

    hout_ref[...] = h_new
    cout_ref[...] = c_new

    # ---- features for the fused fc_out GEMM: [ctx | h_new | emb], zero-padded ----
    feats = jnp.concatenate([ctx, h_new, emb], axis=1)
    pad = K2p - feats.shape[1]
    if pad:
        feats = jnp.concatenate([feats, jnp.zeros((B, pad), f32)], axis=1)
    feats_ref[...] = feats.astype(bf16)


# --------------------------------------------------------------------------
# Kernel C: fc_out as one fused GEMM, tiled over the (padded) vocabulary.
# --------------------------------------------------------------------------
def _fc_out_kernel(feats_ref, w_ref, b_ref, pred_ref):
    pred_ref[...] = (jnp.dot(feats_ref[...], w_ref[...],
                             preferred_element_type=jnp.float32)
                     + b_ref[...])


# --------------------------------------------------------------------------
# Parameters.
# --------------------------------------------------------------------------
def make_params(key, V, E, H, EH, A, padding_idx=0):
    """Deterministic synthetic parameters (no checkpoint load), f32, unfused."""
    EH2 = 2 * EH
    ks = jax.random.split(key, 13)
    u = lambda k, s, sc=0.1: sc * jax.random.uniform(k, s, jnp.float32, -1.0, 1.0)
    emb_tbl = u(ks[0], (V, E)).at[padding_idx].set(0.0)   # nn.Embedding(padding_idx)
    return dict(
        emb_tbl=emb_tbl,
        wh=u(ks[1], (H, A)), we=u(ks[2], (EH2, A)),
        battn=u(ks[3], (1, A)), vattn=u(ks[4], (1, A)),
        wih_a=u(ks[5], (EH2, 4 * H)), wih_e=u(ks[6], (E, 4 * H)),
        whh=u(ks[7], (H, 4 * H)), b_lstm=u(ks[8], (1, 4 * H)),   # b_ih + b_hh folded
        wout_a=u(ks[9], (EH2, V)), wout_h=u(ks[10], (H, V)),
        wout_e=u(ks[11], (E, V)), bout=u(ks[12], (1, V)),
    )


def pack_params(p):
    """One-time packing: fuse the split matmul weights into single GEMM weights,
    zero-pad hidden/vocab dims to lane multiples (128) and cast MXU operands to
    bfloat16 (accumulation stays f32 in-kernel)."""
    V, E = p["emb_tbl"].shape
    H = p["whh"].shape[0]
    Hp = _round_up(H, 128)
    Vp = _round_up(V, 128)
    bf16 = jnp.bfloat16

    def pad_gate_cols(w):            # (K, 4H) -> (K, 4*Hp), per-gate zero padding
        K = w.shape[0]
        w = w.reshape(K, 4, H)
        w = jnp.pad(w, ((0, 0), (0, 0), (0, Hp - H)))
        return w.reshape(K, 4 * Hp)

    # Fused LSTM weight, rows ordered as the in-kernel activation [ctx | emb | h].
    whh = jnp.pad(pad_gate_cols(p["whh"]), ((0, Hp - H), (0, 0)))      # (Hp, 4Hp)
    w_lstm = jnp.concatenate(
        [pad_gate_cols(p["wih_a"]), pad_gate_cols(p["wih_e"]), whh], axis=0)
    b_lstm = pad_gate_cols(p["b_lstm"])                                # (1, 4Hp)

    # Fused fc_out weight, rows ordered as [ctx | h | emb]; padded to (K2p, Vp).
    wout_h = jnp.pad(p["wout_h"], ((0, Hp - H), (0, 0)))               # (Hp, V)
    w_out = jnp.concatenate([p["wout_a"], wout_h, p["wout_e"]], axis=0)
    K2 = w_out.shape[0]
    K2p = _round_up(K2, 128)
    w_out = jnp.pad(w_out, ((0, K2p - K2), (0, Vp - V)))               # (K2p, Vp)
    b_out = jnp.pad(p["bout"], ((0, 0), (0, Vp - V)))                  # (1, Vp)

    wh = jnp.pad(p["wh"], ((0, Hp - H), (0, 0)))                       # (Hp, A)

    return dict(
        emb_tbl=p["emb_tbl"],                    # f32, stays in HBM (DMA row gather)
        we=p["we"].astype(bf16), battn=p["battn"],
        wh=wh.astype(bf16), vattn=p["vattn"],
        w_lstm=w_lstm.astype(bf16), b_lstm=b_lstm,
        w_out=w_out.astype(bf16), b_out=b_out,
    )


# --------------------------------------------------------------------------
# Wrappers.
# --------------------------------------------------------------------------
def encoder_projection(enc_output, pk):
    """e_proj = enc @ We + b_attn.  Constant across decode steps: call once per
    sequence and reuse for every decoder_step."""
    B, T, _ = enc_output.shape
    A = pk["we"].shape[1]
    vmem = lambda: pl.BlockSpec(memory_space=pltpu.MemorySpace.VMEM)
    return pl.pallas_call(
        _enc_proj_kernel,
        out_shape=jax.ShapeDtypeStruct((B, T, A), jnp.float32),
        in_specs=[vmem(), vmem(), vmem()],
        out_specs=vmem(),
    )(enc_output.astype(jnp.bfloat16), pk["we"], pk["battn"])


def decoder_step(x_ids, state, enc_output, e_proj, pk):
    h, c = state                                    # (1, B, H) each (num_layers=1)
    B = x_ids.shape[0]
    H = h.shape[-1]
    V, E = pk["emb_tbl"].shape
    Hp = pk["w_lstm"].shape[1] // 4
    K2p, Vp = pk["w_out"].shape

    h_p = jnp.pad(h[0], ((0, 0), (0, Hp - H)))      # lane-dense, zero-padded state
    c_p = jnp.pad(c[0], ((0, 0), (0, Hp - H)))
    enc_bf = enc_output.astype(jnp.bfloat16)
    ids = x_ids.astype(jnp.int32)

    smem = pl.BlockSpec(memory_space=pltpu.MemorySpace.SMEM)   # token ids: control data
    hbm = pl.BlockSpec(memory_space=pl.ANY)                    # emb table: DMA gather
    vmem = lambda: pl.BlockSpec(memory_space=pltpu.MemorySpace.VMEM)

    hout, cout, feats = pl.pallas_call(
        _decoder_state_kernel,
        out_shape=(jax.ShapeDtypeStruct((B, Hp), jnp.float32),
                   jax.ShapeDtypeStruct((B, Hp), jnp.float32),
                   jax.ShapeDtypeStruct((B, K2p), jnp.bfloat16)),
        in_specs=[smem, hbm, vmem(), vmem(), vmem(), vmem(),
                  vmem(), vmem(), vmem(), vmem()],
        out_specs=(vmem(), vmem(), vmem()),
        scratch_shapes=[pltpu.VMEM((B, E), jnp.float32),
                        pltpu.SemaphoreType.DMA((B,))],
        input_output_aliases={4: 0, 5: 1},          # h -> h_out, c -> c_out in place
    )(ids, pk["emb_tbl"], enc_bf, e_proj, h_p, c_p,
      pk["wh"], pk["vattn"], pk["w_lstm"], pk["b_lstm"])

    # fc_out: single fused GEMM tiled over the padded vocab.  Every output block
    # is a lane-dense multiple of 128; the V axis is "parallel" so v7x megacore
    # splits the vocab tiles across its two TensorCores.
    TV = _pick_vocab_tile(Vp)
    pred_p = pl.pallas_call(
        _fc_out_kernel,
        grid=(Vp // TV,),
        out_shape=jax.ShapeDtypeStruct((B, Vp), jnp.float32),
        in_specs=[pl.BlockSpec((B, K2p), lambda j: (0, 0)),
                  pl.BlockSpec((K2p, TV), lambda j: (0, j)),
                  pl.BlockSpec((1, TV), lambda j: (0, j))],
        out_specs=pl.BlockSpec((B, TV), lambda j: (0, j)),
        compiler_params=pltpu.CompilerParams(
            dimension_semantics=("parallel",)),
    )(feats, pk["w_out"], pk["b_out"])

    pred = pred_p[:, :V]
    return pred, (hout[:, :H][None], cout[:, :H][None])


@jax.jit
def decoder_forward(x_ids, state, enc_output, pk):
    # In a real autoregressive decode loop, call encoder_projection() once per
    # sequence and decoder_step() once per token (and ideally keep the loop /
    # weights resident in-kernel).  Here both are composed to match the
    # single-call semantics of Decoder.forward.
    # TODO(synk): fold the decode loop into the kernel (grid over steps) so the
    # fused weights stay VMEM-resident across steps.
    e_proj = encoder_projection(enc_output, pk)
    return decoder_step(x_ids, state, enc_output, e_proj, pk)


# --------------------------------------------------------------------------
# Pure-JAX f32 reference of the same forward pass (ground truth).
# --------------------------------------------------------------------------
def decoder_ref(x_ids, state, enc_output, p):
    h, c = state[0][0], state[1][0]
    emb = p["emb_tbl"][x_ids]
    e_proj = jnp.einsum("btd,da->bta", enc_output, p["we"])
    energy = jnp.tanh(e_proj + (h @ p["wh"])[:, None, :] + p["battn"][None])
    score = jnp.einsum("bta,a->bt", energy, p["vattn"][0])
    w = jax.nn.softmax(score, axis=1)
    ctx = jnp.einsum("bt,btd->bd", w, enc_output)
    gates = ctx @ p["wih_a"] + emb @ p["wih_e"] + h @ p["whh"] + p["b_lstm"]
    H = h.shape[-1]
    i = jax.nn.sigmoid(gates[:, :H]); f = jax.nn.sigmoid(gates[:, H:2 * H])
    g = jnp.tanh(gates[:, 2 * H:3 * H]); o = jax.nn.sigmoid(gates[:, 3 * H:])
    c_new = f * c + i * g
    h_new = o * jnp.tanh(c_new)
    pred = ctx @ p["wout_a"] + h_new @ p["wout_h"] + emb @ p["wout_e"] + p["bout"]
    return pred, (h_new[None], c_new[None])


if __name__ == "__main__":
    B, T = 8, 8                            # batch, encoder steps
    V, E, H, EH, A = 64, 16, 32, 16, 32    # output_dim, embed, hidden, enc_hidden, attn dim
    key = jax.random.PRNGKey(0)
    kp, kx, ke, kh, kc = jax.random.split(key, 5)

    params = make_params(kp, V, E, H, EH, A, padding_idx=0)
    packed = pack_params(params)           # one-time fuse / pad / bf16 cast

    x_ids = jax.random.randint(kx, (B,), 0, V, jnp.int32)
    enc_output = jax.random.normal(ke, (B, T, 2 * EH), jnp.float32)
    h0 = jax.random.normal(kh, (1, B, H), jnp.float32)
    c0 = jax.random.normal(kc, (1, B, H), jnp.float32)

    pred, (h1, c1) = decoder_forward(x_ids, (h0, c0), enc_output, packed)
    jax.block_until_ready((pred, h1, c1))

    pred_r, (h1_r, c1_r) = decoder_ref(x_ids, (h0, c0), enc_output, params)
    # bf16 MXU operands + approx softmax reciprocal -> loose tolerance vs f32 ref.
    np.testing.assert_allclose(np.asarray(pred), np.asarray(pred_r), atol=2e-2, rtol=2e-2)
    np.testing.assert_allclose(np.asarray(h1), np.asarray(h1_r), atol=2e-2, rtol=2e-2)
    np.testing.assert_allclose(np.asarray(c1), np.asarray(c1_r), atol=2e-2, rtol=2e-2)

    # TODO(synk): the original module injects an external `attention` module and a
    # Dropout(p) layer; attention is fixed to the additive (Bahdanau) form and
    # dropout uses p=0 (identity), matching eval-mode semantics.
    print("KERNEL_OK")
</pallas_src>

<mosaic_0001>
module attributes {stable_mosaic.version = 11 : i64} {
  func.func @_enc_proj_kernel(%arg0: memref<8x8x32xbf16, #tpu.memory_space<vmem>>, %arg1: memref<32x32xbf16, #tpu.memory_space<vmem>>, %arg2: memref<1x32xf32, #tpu.memory_space<vmem>>, %arg3: memref<8x8x32xf32, #tpu.memory_space<vmem>>) attributes {dimension_semantics = [], scalar_prefetch = 0 : i64, scratch_operands = 0 : i64, tpu.core_type = #tpu.core_type<tc>} {
    %c0 = arith.constant 0 : index
    %c0_0 = arith.constant 0 : index
    %c0_1 = arith.constant 0 : index
    %0 = vector.load %arg0[%c0, %c0_0, %c0_1] : memref<8x8x32xbf16, #tpu.memory_space<vmem>>, vector<8x8x32xbf16>
    %1 = vector.shape_cast %0 : vector<8x8x32xbf16> to vector<64x32xbf16>
    %c0_2 = arith.constant 0 : index
    %c0_3 = arith.constant 0 : index
    %2 = vector.load %arg1[%c0_2, %c0_3] : memref<32x32xbf16, #tpu.memory_space<vmem>>, vector<32x32xbf16>
    %cst = arith.constant dense<0.000000e+00> : vector<64x32xf32>
    %3 = tpu.matmul %1, %2, %cst {dimension_numbers = #tpu.dot_dimension_numbers<[1], [0], [0], [1], [0, 0, 1, 1], [], []>} : vector<64x32xbf16>, vector<32x32xbf16>, vector<64x32xf32> -> vector<64x32xf32>
    %4 = vector.shape_cast %3 : vector<64x32xf32> to vector<8x8x32xf32>
    %c0_4 = arith.constant 0 : index
    %c0_5 = arith.constant 0 : index
    %5 = vector.load %arg2[%c0_4, %c0_5] : memref<1x32xf32, #tpu.memory_space<vmem>>, vector<1x32xf32>
    %6 = vector.shape_cast %5 : vector<1x32xf32> to vector<1x1x32xf32>
    %7 = vector.broadcast %6 : vector<1x1x32xf32> to vector<8x8x32xf32>
    %8 = arith.addf %4, %7 : vector<8x8x32xf32>
    %c0_6 = arith.constant 0 : index
    %c0_7 = arith.constant 0 : index
    %c0_8 = arith.constant 0 : index
    %9 = vector.load %arg3[%c0_6, %c0_7, %c0_8] : memref<8x8x32xf32, #tpu.memory_space<vmem>>, vector<8x8x32xf32>
    tpu.vector_store %arg3[%c0_6, %c0_7, %c0_8], %8 {strides = array<i32>} : memref<8x8x32xf32, #tpu.memory_space<vmem>>, vector<8x8x32xf32>,
    return
  }
}

module attributes {stable_mosaic.version = 11 : i64} {
  func.func @_fc_out_kernel(%arg0: i32, %arg1: memref<8x256xbf16, #tpu.memory_space<vmem>>, %arg2: memref<256x128xbf16, #tpu.memory_space<vmem>>, %arg3: memref<1x128xf32, #tpu.memory_space<vmem>>, %arg4: memref<8x128xf32, #tpu.memory_space<vmem>>) attributes {dimension_semantics = [#tpu.dimension_semantics<parallel>], iteration_bounds = array<i64: 1>, scalar_prefetch = 0 : i64, scratch_operands = 0 : i64, tpu.core_type = #tpu.core_type<tc>, window_params = [{pipeline_mode = #tpu.pipeline_mode<synchronous>, transform_indices = @transform_0, window_bounds = array<i64: 8, 256>}, {transform_indices = @transform_1, window_bounds = array<i64: 256, 128>}, {transform_indices = @transform_2, window_bounds = array<i64: 1, 128>}, {transform_indices = @transform_3, window_bounds = array<i64: 8, 128>}]} {
    %c0 = arith.constant 0 : index
    %c0_0 = arith.constant 0 : index
    %0 = vector.load %arg1[%c0, %c0_0] : memref<8x256xbf16, #tpu.memory_space<vmem>>, vector<8x256xbf16>
    %c0_1 = arith.constant 0 : index
    %c0_2 = arith.constant 0 : index
    %1 = vector.load %arg2[%c0_1, %c0_2] : memref<256x128xbf16, #tpu.memory_space<vmem>>, vector<256x128xbf16>
    %cst = arith.constant dense<0.000000e+00> : vector<8x128xf32>
    %2 = tpu.matmul %0, %1, %cst {dimension_numbers = #tpu.dot_dimension_numbers<[1], [0], [0], [1], [0, 0, 1, 1], [], []>} : vector<8x256xbf16>, vector<256x128xbf16>, vector<8x128xf32> -> vector<8x128xf32>
    %c0_3 = arith.constant 0 : index
    %c0_4 = arith.constant 0 : index
    %3 = vector.load %arg3[%c0_3, %c0_4] : memref<1x128xf32, #tpu.memory_space<vmem>>, vector<1x128xf32>
    %4 = vector.broadcast %3 : vector<1x128xf32> to vector<8x128xf32>
    %5 = arith.addf %2, %4 : vector<8x128xf32>
    %c0_5 = arith.constant 0 : index
    %c0_6 = arith.constant 0 : index
    %6 = vector.load %arg4[%c0_5, %c0_6] : memref<8x128xf32, #tpu.memory_space<vmem>>, vector<8x128xf32>
    tpu.vector_store %arg4[%c0_5, %c0_6], %5 {strides = array<i32>} : memref<8x128xf32, #tpu.memory_space<vmem>>, vector<8x128xf32>,
    return
  }
  func.func @transform_0(%arg0: i32) -> (i32, i32) {
    %c0_i32 = arith.constant 0 : i32
    %c0_i32_0 = arith.constant 0 : i32
    %c0_i32_1 = arith.constant 0 : i32
    return %c0_i32, %c0_i32_0 : i32, i32
  }
  func.func @transform_1(%arg0: i32) -> (i32, i32) {
    %c0_i32 = arith.constant 0 : i32
    %c0_i32_0 = arith.constant 0 : i32
    return %c0_i32, %arg0 : i32, i32
  }
  func.func @transform_2(%arg0: i32) -> (i32, i32) {
    %c0_i32 = arith.constant 0 : i32
    %c0_i32_0 = arith.constant 0 : i32
    return %c0_i32, %arg0 : i32, i32
  }
  func.func @transform_3(%arg0: i32) -> (i32, i32) {
    %c0_i32 = arith.constant 0 : i32
    %c0_i32_0 = arith.constant 0 : i32
    return %c0_i32, %arg0 : i32, i32
  }
}

module attributes {stable_mosaic.version = 11 : i64} {
  func.func @_decoder_state_kernel(%arg0: memref<8xi32, #tpu.memory_space<smem>>, %arg1: memref<64x16xf32, #tpu.memory_space<any>>, %arg2: memref<8x8x32xbf16, #tpu.memory_space<vmem>>, %arg3: memref<8x8x32xf32, #tpu.memory_space<vmem>>, %arg4: memref<8x128xf32, #tpu.memory_space<vmem>>, %arg5: memref<8x128xf32, #tpu.memory_space<vmem>>, %arg6: memref<128x32xbf16, #tpu.memory_space<vmem>>, %arg7: memref<1x32xf32, #tpu.memory_space<vmem>>, %arg8: memref<176x512xbf16, #tpu.memory_space<vmem>>, %arg9: memref<1x512xf32, #tpu.memory_space<vmem>>, %arg10: memref<8x128xf32, #tpu.memory_space<vmem>>, %arg11: memref<8x128xf32, #tpu.memory_space<vmem>>, %arg12: memref<8x256xbf16, #tpu.memory_space<vmem>>, %arg13: memref<8x16xf32, #tpu.memory_space<vmem>>, %arg14: memref<8x!tpu.dma_semaphore, #tpu.memory_space<semaphore_mem>>) attributes {dimension_semantics = [], scalar_prefetch = 0 : i64, scratch_operands = 2 : i64, tpu.core_type = #tpu.core_type<tc>} {
    %c0 = arith.constant 0 : index
    %0 = memref.load %arg0[%c0] : memref<8xi32, #tpu.memory_space<smem>>
    %c1 = arith.constant 1 : index
    %1 = memref.load %arg0[%c1] : memref<8xi32, #tpu.memory_space<smem>>
    %c2 = arith.constant 2 : index
    %2 = memref.load %arg0[%c2] : memref<8xi32, #tpu.memory_space<smem>>
    %c3 = arith.constant 3 : index
    %3 = memref.load %arg0[%c3] : memref<8xi32, #tpu.memory_space<smem>>
    %c4 = arith.constant 4 : index
    %4 = memref.load %arg0[%c4] : memref<8xi32, #tpu.memory_space<smem>>
    %c5 = arith.constant 5 : index
    %5 = memref.load %arg0[%c5] : memref<8xi32, #tpu.memory_space<smem>>
    %c6 = arith.constant 6 : index
    %6 = memref.load %arg0[%c6] : memref<8xi32, #tpu.memory_space<smem>>
    %c7 = arith.constant 7 : index
    %7 = memref.load %arg0[%c7] : memref<8xi32, #tpu.memory_space<smem>>
    %c0_i32 = arith.constant 0 : i32
    %c0_i32_0 = arith.constant 0 : i32
    %8 = tpu.memref_slice %arg1[%0, %c0_i32_0] : memref<64x16xf32, #tpu.memory_space<any>> -> memref<1x16xf32, #tpu.memory_space<any>>
    %c0_i32_1 = arith.constant 0 : i32
    %c0_i32_2 = arith.constant 0 : i32
    %9 = tpu.memref_slice %arg13[%c0_i32_1, %c0_i32_2] : memref<8x16xf32, #tpu.memory_space<vmem>> -> memref<1x16xf32, #tpu.memory_space<vmem>>
    %10 = tpu.memref_slice %arg14[%c0_i32] : memref<8x!tpu.dma_semaphore, #tpu.memory_space<semaphore_mem>> -> memref<1x!tpu.dma_semaphore, #tpu.memory_space<semaphore_mem>>
    %11 = tpu.memref_squeeze %10 : memref<1x!tpu.dma_semaphore, #tpu.memory_space<semaphore_mem>> -> memref<!tpu.dma_semaphore, #tpu.memory_space<semaphore_mem>>
    tpu.enqueue_dma source(%8 : memref<1x16xf32, #tpu.memory_space<any>>) target(%9 : memref<1x16xf32, #tpu.memory_space<vmem>>) target_semaphore(%11 : memref<!tpu.dma_semaphore, #tpu.memory_space<semaphore_mem>>)
    %c1_i32 = arith.constant 1 : i32
    %c0_i32_3 = arith.constant 0 : i32
    %12 = tpu.memref_slice %arg1[%1, %c0_i32_3] : memref<64x16xf32, #tpu.memory_space<any>> -> memref<1x16xf32, #tpu.memory_space<any>>
    %c1_i32_4 = arith.constant 1 : i32
    %c0_i32_5 = arith.constant 0 : i32
    %13 = tpu.memref_slice %arg13[%c1_i32_4, %c0_i32_5] : memref<8x16xf32, #tpu.memory_space<vmem>> -> memref<1x16xf32, #tpu.memory_space<vmem>>
    %14 = tpu.memref_slice %arg14[%c1_i32] : memref<8x!tpu.dma_semaphore, #tpu.memory_space<semaphore_mem>> -> memref<1x!tpu.dma_semaphore, #tpu.memory_space<semaphore_mem>>
    %15 = tpu.memref_squeeze %14 : memref<1x!tpu.dma_semaphore, #tpu.memory_space<semaphore_mem>> -> memref<!tpu.dma_semaphore, #tpu.memory_space<semaphore_mem>>
    tpu.enqueue_dma source(%12 : memref<1x16xf32, #tpu.memory_space<any>>) target(%13 : memref<1x16xf32, #tpu.memory_space<vmem>>) target_semaphore(%15 : memref<!tpu.dma_semaphore, #tpu.memory_space<semaphore_mem>>)
    %c2_i32 = arith.constant 2 : i32
    %c0_i32_6 = arith.constant 0 : i32
    %16 = tpu.memref_slice %arg1[%2, %c0_i32_6] : memref<64x16xf32, #tpu.memory_space<any>> -> memref<1x16xf32, #tpu.memory_space<any>>
    %c2_i32_7 = arith.constant 2 : i32
    %c0_i32_8 = arith.constant 0 : i32
    %17 = tpu.memref_slice %arg13[%c2_i32_7, %c0_i32_8] : memref<8x16xf32, #tpu.memory_space<vmem>> -> memref<1x16xf32, #tpu.memory_space<vmem>>
    %18 = tpu.memref_slice %arg14[%c2_i32] : memref<8x!tpu.dma_semaphore, #tpu.memory_space<semaphore_mem>> -> memref<1x!tpu.dma_semaphore, #tpu.memory_space<semaphore_mem>>
    %19 = tpu.memref_squeeze %18 : memref<1x!tpu.dma_semaphore, #tpu.memory_space<semaphore_mem>> -> memref<!tpu.dma_semaphore, #tpu.memory_space<semaphore_mem>>
    tpu.enqueue_dma source(%16 : memref<1x16xf32, #tpu.memory_space<any>>) target(%17 : memref<1x16xf32, #tpu.memory_space<vmem>>) target_semaphore(%19 : memref<!tpu.dma_semaphore, #tpu.memory_space<semaphore_mem>>)
    %c3_i32 = arith.constant 3 : i32
    %c0_i32_9 = arith.constant 0 : i32
    %20 = tpu.memref_slice %arg1[%3, %c0_i32_9] : memref<64x16xf32, #tpu.memory_space<any>> -> memref<1x16xf32, #tpu.memory_space<any>>
    %c3_i32_10 = arith.constant 3 : i32
    %c0_i32_11 = arith.constant 0 : i32
    %21 = tpu.memref_slice %arg13[%c3_i32_10, %c0_i32_11] : memref<8x16xf32, #tpu.memory_space<vmem>> -> memref<1x16xf32, #tpu.memory_space<vmem>>
    %22 = tpu.memref_slice %arg14[%c3_i32] : memref<8x!tpu.dma_semaphore, #tpu.memory_space<semaphore_mem>> -> memref<1x!tpu.dma_semaphore, #tpu.memory_space<semaphore_mem>>
    %23 = tpu.memref_squeeze %22 : memref<1x!tpu.dma_semaphore, #tpu.memory_space<semaphore_mem>> -> memref<!tpu.dma_semaphore, #tpu.memory_space<semaphore_mem>>
    tpu.enqueue_dma source(%20 : memref<1x16xf32, #tpu.memory_space<any>>) target(%21 : memref<1x16xf32, #tpu.memory_space<vmem>>) target_semaphore(%23 : memref<!tpu.dma_semaphore, #tpu.memory_space<semaphore_mem>>)
    %c4_i32 = arith.constant 4 : i32
    %c0_i32_12 = arith.constant 0 : i32
    %24 = tpu.memref_slice %arg1[%4, %c0_i32_12] : memref<64x16xf32, #tpu.memory_space<any>> -> memref<1x16xf32, #tpu.memory_space<any>>
    %c4_i32_13 = arith.constant 4 : i32
    %c0_i32_14 = arith.constant 0 : i32
    %25 = tpu.memref_slice %arg13[%c4_i32_13, %c0_i32_14] : memref<8x16xf32, #tpu.memory_space<vmem>> -> memref<1x16xf32, #tpu.memory_space<vmem>>
    %26 = tpu.memref_slice %arg14[%c4_i32] : memref<8x!tpu.dma_semaphore, #tpu.memory_space<semaphore_mem>> -> memref<1x!tpu.dma_semaphore, #tpu.memory_space<semaphore_mem>>
    %27 = tpu.memref_squeeze %26 : memref<1x!tpu.dma_semaphore, #tpu.memory_space<semaphore_mem>> -> memref<!tpu.dma_semaphore, #tpu.memory_space<semaphore_mem>>
    tpu.enqueue_dma source(%24 : memref<1x16xf32, #tpu.memory_space<any>>) target(%25 : memref<1x16xf32, #tpu.memory_space<vmem>>) target_semaphore(%27 : memref<!tpu.dma_semaphore, #tpu.memory_space<semaphore_mem>>)
    %c5_i32 = arith.constant 5 : i32
    %c0_i32_15 = arith.constant 0 : i32
    %28 = tpu.memref_slice %arg1[%5, %c0_i32_15] : memref<64x16xf32, #tpu.memory_space<any>> -> memref<1x16xf32, #tpu.memory_space<any>>
    %c5_i32_16 = arith.constant 5 : i32
    %c0_i32_17 = arith.constant 0 : i32
    %29 = tpu.memref_slice %arg13[%c5_i32_16, %c0_i32_17] : memref<8x16xf32, #tpu.memory_space<vmem>> -> memref<1x16xf32, #tpu.memory_space<vmem>>
    %30 = tpu.memref_slice %arg14[%c5_i32] : memref<8x!tpu.dma_semaphore, #tpu.memory_space<semaphore_mem>> -> memref<1x!tpu.dma_semaphore, #tpu.memory_space<semaphore_mem>>
    %31 = tpu.memref_squeeze %30 : memref<1x!tpu.dma_semaphore, #tpu.memory_space<semaphore_mem>> -> memref<!tpu.dma_semaphore, #tpu.memory_space<semaphore_mem>>
    tpu.enqueue_dma source(%28 : memref<1x16xf32, #tpu.memory_space<any>>) target(%29 : memref<1x16xf32, #tpu.memory_space<vmem>>) target_semaphore(%31 : memref<!tpu.dma_semaphore, #tpu.memory_space<semaphore_mem>>)
    %c6_i32 = arith.constant 6 : i32
    %c0_i32_18 = arith.constant 0 : i32
    %32 = tpu.memref_slice %arg1[%6, %c0_i32_18] : memref<64x16xf32, #tpu.memory_space<any>> -> memref<1x16xf32, #tpu.memory_space<any>>
    %c6_i32_19 = arith.constant 6 : i32
    %c0_i32_20 = arith.constant 0 : i32
    %33 = tpu.memref_slice %arg13[%c6_i32_19, %c0_i32_20] : memref<8x16xf32, #tpu.memory_space<vmem>> -> memref<1x16xf32, #tpu.memory_space<vmem>>
    %34 = tpu.memref_slice %arg14[%c6_i32] : memref<8x!tpu.dma_semaphore, #tpu.memory_space<semaphore_mem>> -> memref<1x!tpu.dma_semaphore, #tpu.memory_space<semaphore_mem>>
    %35 = tpu.memref_squeeze %34 : memref<1x!tpu.dma_semaphore, #tpu.memory_space<semaphore_mem>> -> memref<!tpu.dma_semaphore, #tpu.memory_space<semaphore_mem>>
    tpu.enqueue_dma source(%32 : memref<1x16xf32, #tpu.memory_space<any>>) target(%33 : memref<1x16xf32, #tpu.memory_space<vmem>>) target_semaphore(%35 : memref<!tpu.dma_semaphore, #tpu.memory_space<semaphore_mem>>)
    %c7_i32 = arith.constant 7 : i32
    %c0_i32_21 = arith.constant 0 : i32
    %36 = tpu.memref_slice %arg1[%7, %c0_i32_21] : memref<64x16xf32, #tpu.memory_space<any>> -> memref<1x16xf32, #tpu.memory_space<any>>
    %c7_i32_22 = arith.constant 7 : i32
    %c0_i32_23 = arith.constant 0 : i32
    %37 = tpu.memref_slice %arg13[%c7_i32_22, %c0_i32_23] : memref<8x16xf32, #tpu.memory_space<vmem>> -> memref<1x16xf32, #tpu.memory_space<vmem>>
    %38 = tpu.memref_slice %arg14[%c7_i32] : memref<8x!tpu.dma_semaphore, #tpu.memory_space<semaphore_mem>> -> memref<1x!tpu.dma_semaphore, #tpu.memory_space<semaphore_mem>>
    %39 = tpu.memref_squeeze %38 : memref<1x!tpu.dma_semaphore, #tpu.memory_space<semaphore_mem>> -> memref<!tpu.dma_semaphore, #tpu.memory_space<semaphore_mem>>
    tpu.enqueue_dma source(%36 : memref<1x16xf32, #tpu.memory_space<any>>) target(%37 : memref<1x16xf32, #tpu.memory_space<vmem>>) target_semaphore(%39 : memref<!tpu.dma_semaphore, #tpu.memory_space<semaphore_mem>>)
    %c0_24 = arith.constant 0 : index
    %c0_25 = arith.constant 0 : index
    %40 = vector.load %arg4[%c0_24, %c0_25] : memref<8x128xf32, #tpu.memory_space<vmem>>, vector<8x128xf32>
    %c0_26 = arith.constant 0 : index
    %c0_27 = arith.constant 0 : index
    %41 = vector.load %arg5[%c0_26, %c0_27] : memref<8x128xf32, #tpu.memory_space<vmem>>, vector<8x128xf32>
    %c0_28 = arith.constant 0 : index
    %c0_29 = arith.constant 0 : index
    %c0_30 = arith.constant 0 : index
    %42 = vector.load %arg2[%c0_28, %c0_29, %c0_30] : memref<8x8x32xbf16, #tpu.memory_space<vmem>>, vector<8x8x32xbf16>
    %43 = arith.extf %42 : vector<8x8x32xbf16> to vector<8x8x32xf32>
    %44 = arith.truncf %40 : vector<8x128xf32> to vector<8x128xbf16>
    %c0_31 = arith.constant 0 : index
    %c0_32 = arith.constant 0 : index
    %45 = vector.load %arg6[%c0_31, %c0_32] : memref<128x32xbf16, #tpu.memory_space<vmem>>, vector<128x32xbf16>
    %cst = arith.constant dense<0.000000e+00> : vector<8x32xf32>
    %46 = tpu.matmul %44, %45, %cst {dimension_numbers = #tpu.dot_dimension_numbers<[1], [0], [0], [1], [0, 0, 1, 1], [], []>} : vector<8x128xbf16>, vector<128x32xbf16>, vector<8x32xf32> -> vector<8x32xf32>
    %c0_33 = arith.constant 0 : index
    %c0_34 = arith.constant 0 : index
    %c0_35 = arith.constant 0 : index
    %47 = vector.load %arg3[%c0_33, %c0_34, %c0_35] : memref<8x8x32xf32, #tpu.memory_space<vmem>>, vector<8x8x32xf32>
    %48 = vector.shape_cast %46 : vector<8x32xf32> to vector<8x1x32xf32>
    %49 = vector.broadcast %48 : vector<8x1x32xf32> to vector<8x8x32xf32>
    %50 = arith.addf %47, %49 : vector<8x8x32xf32>
    %51 = math.tanh %50 : vector<8x8x32xf32>
    %c0_36 = arith.constant 0 : index
    %c0_37 = arith.constant 0 : index
    %52 = vector.load %arg7[%c0_36, %c0_37] : memref<1x32xf32, #tpu.memory_space<vmem>>, vector<1x32xf32>
    %53 = vector.shape_cast %52 : vector<1x32xf32> to vector<1x1x32xf32>
    %54 = vector.broadcast %53 : vector<1x1x32xf32> to vector<8x8x32xf32>
    %55 = arith.mulf %51, %54 : vector<8x8x32xf32>
    %cst_38 = arith.constant dense<0.000000e+00> : vector<8x8xf32>
    %56 = vector.multi_reduction <add>, %55, %cst_38 [2] : vector<8x8x32xf32> to vector<8x8xf32>
    %cst_39 = arith.constant dense<0xFF800000> : vector<8xf32>
    %57 = vector.multi_reduction <maximumf>, %56, %cst_39 [1] : vector<8x8xf32> to vector<8xf32>
    %58 = vector.shape_cast %57 : vector<8xf32> to vector<8x1xf32>
    %59 = vector.broadcast %58 : vector<8x1xf32> to vector<8x8xf32>
    %60 = arith.subf %56, %59 : vector<8x8xf32>
    %61 = math.exp %60 : vector<8x8xf32>
    %cst_40 = arith.constant dense<0.000000e+00> : vector<8xf32>
    %62 = vector.multi_reduction <add>, %61, %cst_40 [1] : vector<8x8xf32> to vector<8xf32>
    %63 = vector.shape_cast %62 : vector<8xf32> to vector<8x1xf32>
    %64 = tpu.reciprocal %63 {approx = true} : vector<8x1xf32> -> vector<8x1xf32>
    %65 = vector.broadcast %64 : vector<8x1xf32> to vector<8x8xf32>
    %66 = arith.mulf %61, %65 : vector<8x8xf32>
    %67 = vector.shape_cast %66 : vector<8x8xf32> to vector<8x8x1xf32>
    %68 = vector.broadcast %67 : vector<8x8x1xf32> to vector<8x8x32xf32>
    %69 = arith.mulf %68, %43 : vector<8x8x32xf32>
    %cst_41 = arith.constant dense<0.000000e+00> : vector<8x32xf32>
    %70 = vector.multi_reduction <add>, %69, %cst_41 [1] : vector<8x8x32xf32> to vector<8x32xf32>
    %c0_i32_42 = arith.constant 0 : i32
    %c0_i32_43 = arith.constant 0 : i32
    %71 = tpu.memref_slice %arg1[%0, %c0_i32_43] : memref<64x16xf32, #tpu.memory_space<any>> -> memref<1x16xf32, #tpu.memory_space<any>>
    %c0_i32_44 = arith.constant 0 : i32
    %c0_i32_45 = arith.constant 0 : i32
    %72 = tpu.memref_slice %arg13[%c0_i32_44, %c0_i32_45] : memref<8x16xf32, #tpu.memory_space<vmem>> -> memref<1x16xf32, #tpu.memory_space<vmem>>
    %73 = tpu.memref_slice %arg14[%c0_i32_42] : memref<8x!tpu.dma_semaphore, #tpu.memory_space<semaphore_mem>> -> memref<1x!tpu.dma_semaphore, #tpu.memory_space<semaphore_mem>>
    %74 = tpu.memref_squeeze %73 : memref<1x!tpu.dma_semaphore, #tpu.memory_space<semaphore_mem>> -> memref<!tpu.dma_semaphore, #tpu.memory_space<semaphore_mem>>
    tpu.wait_dma2 semaphore(%74 : memref<!tpu.dma_semaphore, #tpu.memory_space<semaphore_mem>>) src(%71 : memref<1x16xf32, #tpu.memory_space<any>>) dst(%72 : memref<1x16xf32, #tpu.memory_space<vmem>>)
    %c1_i32_46 = arith.constant 1 : i32
    %c0_i32_47 = arith.constant 0 : i32
    %75 = tpu.memref_slice %arg1[%1, %c0_i32_47] : memref<64x16xf32, #tpu.memory_space<any>> -> memref<1x16xf32, #tpu.memory_space<any>>
    %c1_i32_48 = arith.constant 1 : i32
    %c0_i32_49 = arith.constant 0 : i32
    %76 = tpu.memref_slice %arg13[%c1_i32_48, %c0_i32_49] : memref<8x16xf32, #tpu.memory_space<vmem>> -> memref<1x16xf32, #tpu.memory_space<vmem>>
    %77 = tpu.memref_slice %arg14[%c1_i32_46] : memref<8x!tpu.dma_semaphore, #tpu.memory_space<semaphore_mem>> -> memref<1x!tpu.dma_semaphore, #tpu.memory_space<semaphore_mem>>
    %78 = tpu.memref_squeeze %77 : memref<1x!tpu.dma_semaphore, #tpu.memory_space<semaphore_mem>> -> memref<!tpu.dma_semaphore, #tpu.memory_space<semaphore_mem>>
    tpu.wait_dma2 semaphore(%78 : memref<!tpu.dma_semaphore, #tpu.memory_space<semaphore_mem>>) src(%75 : memref<1x16xf32, #tpu.memory_space<any>>) dst(%76 : memref<1x16xf32, #tpu.memory_space<vmem>>)
    %c2_i32_50 = arith.constant 2 : i32
    %c0_i32_51 = arith.constant 0 : i32
    %79 = tpu.memref_slice %arg1[%2, %c0_i32_51] : memref<64x16xf32, #tpu.memory_space<any>> -> memref<1x16xf32, #tpu.memory_space<any>>
    %c2_i32_52 = arith.constant 2 : i32
    %c0_i32_53 = arith.constant 0 : i32
    %80 = tpu.memref_slice %arg13[%c2_i32_52, %c0_i32_53] : memref<8x16xf32, #tpu.memory_space<vmem>> -> memref<1x16xf32, #tpu.memory_space<vmem>>
    %81 = tpu.memref_slice %arg14[%c2_i32_50] : memref<8x!tpu.dma_semaphore, #tpu.memory_space<semaphore_mem>> -> memref<1x!tpu.dma_semaphore, #tpu.memory_space<semaphore_mem>>
    %82 = tpu.memref_squeeze %81 : memref<1x!tpu.dma_semaphore, #tpu.memory_space<semaphore_mem>> -> memref<!tpu.dma_semaphore, #tpu.memory_space<semaphore_mem>>
    tpu.wait_dma2 semaphore(%82 : memref<!tpu.dma_semaphore, #tpu.memory_space<semaphore_mem>>) src(%79 : memref<1x16xf32, #tpu.memory_space<any>>) dst(%80 : memref<1x16xf32, #tpu.memory_space<vmem>>)
    %c3_i32_54 = arith.constant 3 : i32
    %c0_i32_55 = arith.constant 0 : i32
    %83 = tpu.memref_slice %arg1[%3, %c0_i32_55] : memref<64x16xf32, #tpu.memory_space<any>> -> memref<1x16xf32, #tpu.memory_space<any>>
    %c3_i32_56 = arith.constant 3 : i32
    %c0_i32_57 = arith.constant 0 : i32
    %84 = tpu.memref_slice %arg13[%c3_i32_56, %c0_i32_57] : memref<8x16xf32, #tpu.memory_space<vmem>> -> memref<1x16xf32, #tpu.memory_space<vmem>>
    %85 = tpu.memref_slice %arg14[%c3_i32_54] : memref<8x!tpu.dma_semaphore, #tpu.memory_space<semaphore_mem>> -> memref<1x!tpu.dma_semaphore, #tpu.memory_space<semaphore_mem>>
    %86 = tpu.memref_squeeze %85 : memref<1x!tpu.dma_semaphore, #tpu.memory_space<semaphore_mem>> -> memref<!tpu.dma_semaphore, #tpu.memory_space<semaphore_mem>>
    tpu.wait_dma2 semaphore(%86 : memref<!tpu.dma_semaphore, #tpu.memory_space<semaphore_mem>>) src(%83 : memref<1x16xf32, #tpu.memory_space<any>>) dst(%84 : memref<1x16xf32, #tpu.memory_space<vmem>>)
    %c4_i32_58 = arith.constant 4 : i32
    %c0_i32_59 = arith.constant 0 : i32
    %87 = tpu.memref_slice %arg1[%4, %c0_i32_59] : memref<64x16xf32, #tpu.memory_space<any>> -> memref<1x16xf32, #tpu.memory_space<any>>
    %c4_i32_60 = arith.constant 4 : i32
    %c0_i32_61 = arith.constant 0 : i32
    %88 = tpu.memref_slice %arg13[%c4_i32_60, %c0_i32_61] : memref<8x16xf32, #tpu.memory_space<vmem>> -> memref<1x16xf32, #tpu.memory_space<vmem>>
    %89 = tpu.memref_slice %arg14[%c4_i32_58] : memref<8x!tpu.dma_semaphore, #tpu.memory_space<semaphore_mem>> -> memref<1x!tpu.dma_semaphore, #tpu.memory_space<semaphore_mem>>
    %90 = tpu.memref_squeeze %89 : memref<1x!tpu.dma_semaphore, #tpu.memory_space<semaphore_mem>> -> memref<!tpu.dma_semaphore, #tpu.memory_space<semaphore_mem>>
    tpu.wait_dma2 semaphore(%90 : memref<!tpu.dma_semaphore, #tpu.memory_space<semaphore_mem>>) src(%87 : memref<1x16xf32, #tpu.memory_space<any>>) dst(%88 : memref<1x16xf32, #tpu.memory_space<vmem>>)
    %c5_i32_62 = arith.constant 5 : i32
    %c0_i32_63 = arith.constant 0 : i32
    %91 = tpu.memref_slice %arg1[%5, %c0_i32_63] : memref<64x16xf32, #tpu.memory_space<any>> -> memref<1x16xf32, #tpu.memory_space<any>>
    %c5_i32_64 = arith.constant 5 : i32
    %c0_i32_65 = arith.constant 0 : i32
    %92 = tpu.memref_slice %arg13[%c5_i32_64, %c0_i32_65] : memref<8x16xf32, #tpu.memory_space<vmem>> -> memref<1x16xf32, #tpu.memory_space<vmem>>
    %93 = tpu.memref_slice %arg14[%c5_i32_62] : memref<8x!tpu.dma_semaphore, #tpu.memory_space<semaphore_mem>> -> memref<1x!tpu.dma_semaphore, #tpu.memory_space<semaphore_mem>>
    %94 = tpu.memref_squeeze %93 : memref<1x!tpu.dma_semaphore, #tpu.memory_space<semaphore_mem>> -> memref<!tpu.dma_semaphore, #tpu.memory_space<semaphore_mem>>
    tpu.wait_dma2 semaphore(%94 : memref<!tpu.dma_semaphore, #tpu.memory_space<semaphore_mem>>) src(%91 : memref<1x16xf32, #tpu.memory_space<any>>) dst(%92 : memref<1x16xf32, #tpu.memory_space<vmem>>)
    %c6_i32_66 = arith.constant 6 : i32
    %c0_i32_67 = arith.constant 0 : i32
    %95 = tpu.memref_slice %arg1[%6, %c0_i32_67] : memref<64x16xf32, #tpu.memory_space<any>> -> memref<1x16xf32, #tpu.memory_space<any>>
    %c6_i32_68 = arith.constant 6 : i32
    %c0_i32_69 = arith.constant 0 : i32
    %96 = tpu.memref_slice %arg13[%c6_i32_68, %c0_i32_69] : memref<8x16xf32, #tpu.memory_space<vmem>> -> memref<1x16xf32, #tpu.memory_space<vmem>>
    %97 = tpu.memref_slice %arg14[%c6_i32_66] : memref<8x!tpu.dma_semaphore, #tpu.memory_space<semaphore_mem>> -> memref<1x!tpu.dma_semaphore, #tpu.memory_space<semaphore_mem>>
    %98 = tpu.memref_squeeze %97 : memref<1x!tpu.dma_semaphore, #tpu.memory_space<semaphore_mem>> -> memref<!tpu.dma_semaphore, #tpu.memory_space<semaphore_mem>>
    tpu.wait_dma2 semaphore(%98 : memref<!tpu.dma_semaphore, #tpu.memory_space<semaphore_mem>>) src(%95 : memref<1x16xf32, #tpu.memory_space<any>>) dst(%96 : memref<1x16xf32, #tpu.memory_space<vmem>>)
    %c7_i32_70 = arith.constant 7 : i32
    %c0_i32_71 = arith.constant 0 : i32
    %99 = tpu.memref_slice %arg1[%7, %c0_i32_71] : memref<64x16xf32, #tpu.memory_space<any>> -> memref<1x16xf32, #tpu.memory_space<any>>
    %c7_i32_72 = arith.constant 7 : i32
    %c0_i32_73 = arith.constant 0 : i32
    %100 = tpu.memref_slice %arg13[%c7_i32_72, %c0_i32_73] : memref<8x16xf32, #tpu.memory_space<vmem>> -> memref<1x16xf32, #tpu.memory_space<vmem>>
    %101 = tpu.memref_slice %arg14[%c7_i32_70] : memref<8x!tpu.dma_semaphore, #tpu.memory_space<semaphore_mem>> -> memref<1x!tpu.dma_semaphore, #tpu.memory_space<semaphore_mem>>
    %102 = tpu.memref_squeeze %101 : memref<1x!tpu.dma_semaphore, #tpu.memory_space<semaphore_mem>> -> memref<!tpu.dma_semaphore, #tpu.memory_space<semaphore_mem>>
    tpu.wait_dma2 semaphore(%102 : memref<!tpu.dma_semaphore, #tpu.memory_space<semaphore_mem>>) src(%99 : memref<1x16xf32, #tpu.memory_space<any>>) dst(%100 : memref<1x16xf32, #tpu.memory_space<vmem>>)
    %c0_74 = arith.constant 0 : index
    %c0_75 = arith.constant 0 : index
    %103 = vector.load %arg13[%c0_74, %c0_75] : memref<8x16xf32, #tpu.memory_space<vmem>>, vector<8x16xf32>
    %104 = tpu.concatenate %70, %103, %40 in 1 : vector<8x32xf32>, vector<8x16xf32>, vector<8x128xf32> -> vector<8x176xf32>
    %105 = arith.truncf %104 : vector<8x176xf32> to vector<8x176xbf16>
    %c0_76 = arith.constant 0 : index
    %c0_77 = arith.constant 0 : index
    %106 = vector.load %arg8[%c0_76, %c0_77] : memref<176x512xbf16, #tpu.memory_space<vmem>>, vector<176x512xbf16>
    %cst_78 = arith.constant dense<0.000000e+00> : vector<8x512xf32>
    %107 = tpu.matmul %105, %106, %cst_78 {dimension_numbers = #tpu.dot_dimension_numbers<[1], [0], [0], [1], [0, 0, 1, 1], [], []>} : vector<8x176xbf16>, vector<176x512xbf16>, vector<8x512xf32> -> vector<8x512xf32>
    %c0_79 = arith.constant 0 : index
    %c0_80 = arith.constant 0 : index
    %108 = vector.load %arg9[%c0_79, %c0_80] : memref<1x512xf32, #tpu.memory_space<vmem>>, vector<1x512xf32>
    %109 = vector.broadcast %108 : vector<1x512xf32> to vector<8x512xf32>
    %110 = arith.addf %107, %109 : vector<8x512xf32>
    %111 = vector.extract_strided_slice %110 {offsets = [0, 0], sizes = [8, 128], strides = [1, 1]} : vector<8x512xf32> to vector<8x128xf32>
    %112 = arith.negf %111 : vector<8x128xf32>
    %113 = math.exp %112 : vector<8x128xf32>
    %cst_81 = arith.constant 1.000000e+00 : f32
    %114 = vector.broadcast %cst_81 : f32 to vector<8x128xf32>
    %115 = arith.addf %114, %113 : vector<8x128xf32>
    %116 = arith.divf %114, %115 : vector<8x128xf32>
    %117 = vector.extract_strided_slice %110 {offsets = [0, 128], sizes = [8, 128], strides = [1, 1]} : vector<8x512xf32> to vector<8x128xf32>
    %118 = arith.negf %117 : vector<8x128xf32>
    %119 = math.exp %118 : vector<8x128xf32>
    %cst_82 = arith.constant 1.000000e+00 : f32
    %120 = vector.broadcast %cst_82 : f32 to vector<8x128xf32>
    %121 = arith.addf %120, %119 : vector<8x128xf32>
    %122 = arith.divf %120, %121 : vector<8x128xf32>
    %123 = vector.extract_strided_slice %110 {offsets = [0, 256], sizes = [8, 128], strides = [1, 1]} : vector<8x512xf32> to vector<8x128xf32>
    %124 = math.tanh %123 : vector<8x128xf32>
    %125 = vector.extract_strided_slice %110 {offsets = [0, 384], sizes = [8, 128], strides = [1, 1]} : vector<8x512xf32> to vector<8x128xf32>
    %126 = arith.negf %125 : vector<8x128xf32>
    %127 = math.exp %126 : vector<8x128xf32>
    %cst_83 = arith.constant 1.000000e+00 : f32
    %128 = vector.broadcast %cst_83 : f32 to vector<8x128xf32>
    %129 = arith.addf %128, %127 : vector<8x128xf32>
    %130 = arith.divf %128, %129 : vector<8x128xf32>
    %131 = arith.mulf %122, %41 : vector<8x128xf32>
    %132 = arith.mulf %116, %124 : vector<8x128xf32>
    %133 = arith.addf %131, %132 : vector<8x128xf32>
    %134 = math.tanh %133 : vector<8x128xf32>
    %135 = arith.mulf %130, %134 : vector<8x128xf32>
    %c0_84 = arith.constant 0 : index
    %c0_85 = arith.constant 0 : index
    %136 = vector.load %arg10[%c0_84, %c0_85] : memref<8x128xf32, #tpu.memory_space<vmem>>, vector<8x128xf32>
    tpu.vector_store %arg10[%c0_84, %c0_85], %135 {strides = array<i32>} : memref<8x128xf32, #tpu.memory_space<vmem>>, vector<8x128xf32>,
    %c0_86 = arith.constant 0 : index
    %c0_87 = arith.constant 0 : index
    %137 = vector.load %arg11[%c0_86, %c0_87] : memref<8x128xf32, #tpu.memory_space<vmem>>, vector<8x128xf32>
    tpu.vector_store %arg11[%c0_86, %c0_87], %133 {strides = array<i32>} : memref<8x128xf32, #tpu.memory_space<vmem>>, vector<8x128xf32>,
    %138 = tpu.concatenate %70, %135, %103 in 1 : vector<8x32xf32>, vector<8x128xf32>, vector<8x16xf32> -> vector<8x176xf32>
    %cst_88 = arith.constant 0.000000e+00 : f32
    %139 = vector.broadcast %cst_88 : f32 to vector<8x80xf32>
    %140 = tpu.concatenate %138, %139 in 1 : vector<8x176xf32>, vector<8x80xf32> -> vector<8x256xf32>
    %141 = arith.truncf %140 : vector<8x256xf32> to vector<8x256xbf16>
    %c0_89 = arith.constant 0 : index
    %c0_90 = arith.constant 0 : index
    %142 = vector.load %arg12[%c0_89, %c0_90] : memref<8x256xbf16, #tpu.memory_space<vmem>>, vector<8x256xbf16>
    tpu.vector_store %arg12[%c0_89, %c0_90], %141 {strides = array<i32>} : memref<8x256xbf16, #tpu.memory_space<vmem>>, vector<8x256xbf16>,
    return
  }
}

</mosaic_0001>

<bundles_post_ra>
// kernel: decoder_forward.3
= control target key start
LH: loop header
LB: loop body
LE: loop exit
PB: predicated region body
PF: predicated region fallthrough
CT: control target
= control target key end

     0   :  { %8 = vsyncpa [#allocation3], 0  ;;  %s241_s12 = smov [#allocation2]   ;;  %s328_s0 = inlined_call_operand.vmem [shape: bf16[8,8,32], index: 0, kind: input, shape index: {}]   ;;  %s329_s1 = inlined_call_operand.vmem [shape: bf16[32,32], index: 1, kind: input, shape index: {}]   ;;  %s330_s2 = inlined_call_operand.hbm [shape: f32[1,32], index: 2, kind: input, shape index: {}]   ;;  %s331_s3 = inlined_call_operand.vmem [shape: f32[8,8,32], index: 3, kind: output, shape index: {}]  }
   0x1   :  { %s19_s13 = sshll.u32 %s241_s12, 4  ;;  %s217_s16 = scalar_lea.hbm %s330_s2, 16  ;;  %s20_s13 = int_to_ptr.vmem [resolvable:$true] %s19_s13 }
   0x2   :  { %p218_p0 = scmp.ne.s32.totalorder %s330_s2, %s217_s16  ;;  %p221_p1 = scmp.lt.u32.totalorder %s217_s16, %s330_s2 }
   0x4   :  { %p223_p2 = pnand %p221_p1, %p218_p0 }
   0x6   :  { %226 = shalt.err (!%p223_p2)
}
   0x7   :  { %s227_s21 = scalar_lea.vmem %s20_s13, 16  ;;  %s231_s22 = scalar_lea.vmem %s20_s13, 32 }
   0x8   :  { %p228_p3 = scmp.ne.s32.totalorder %s20_s13, %s227_s21  ;;  %p232_p4 = scmp.lt.s32.totalorder %s20_s13, %s20_s13 }
   0x9   :  { %p233_p5 = scmp.lt.s32.totalorder %s231_s22, %s227_s21 }
   0xb   :  { %p234_p6 = por %p233_p5, %p232_p4 }
   0xd   :  { %p235_p7 = pnand %p234_p6, %p228_p3 }
   0xf   :  { %238 = shalt.err (!%p235_p7)
}
  0x10   :  { %22 = dma.hbm_to_vmem [thread:$0]  %s330_s2, 16, %s20_s13, [#allocation3]  }
  0x11   :  { %239 = dma.done.wait [#allocation3], 16  }
  0x12   :  { %240 = vsyncadd [#allocation3], 4294967280  ;;  %v211_v0 = vld [vmem:[%s329_s1] sm:$0xff]   ;;  %v212_v1 = vld [vmem:[%s329_s1 + $0x8] sm:$0xff]   ;;  %vm71_vm0 = vcmask 261120  }
  0x13   :  { %194 = vmatprep.subr.bf16.mxu0 %v211_v0  ;;  %206 = vmatprep.subr.bf16.mxu1 %v211_v0  ;;  %v213_v2 = vld [vmem:[%s328_s0] sm:$0xff]   ;;  %v214_v3 = vld [vmem:[%s328_s0 + $0x10] sm:$0xff]   ;;  %v215_v4 = vld [vmem:[%s328_s0 + $0x8] sm:$0xff]  }
  0x14   :  { %195 = vmatpush3.bf16.msra.mxu0 %v211_v0  ;;  %208 = vmatpush3.bf16.msra.mxu1 %v211_v0  ;;  %v216_v5 = vld [vmem:[%s328_s0 + $0x18] sm:$0xff]   ;;  %v187_v6 = vld [vmem:[#allocation2] ss:$0 sm:$0xff] }
  0x15   :  { %196 = vmatprep.subr.bf16.mxu0 %v212_v1  ;;  %207 = vmatprep.subr.bf16.mxu1 %v212_v1 }
  0x16   :  { %198 = vmatprep.mubr.msk.bf16.mxu0 %vm71_vm0, %v213_v2  ;;  %202 = vmatprep.mubr.msk.bf16.mxu1 %vm71_vm0, %v214_v3 }
  0x18   :  { %197 = vmatpush3.bf16.msra.mxu0 %v212_v1  ;;  %209 = vmatpush3.bf16.msra.mxu1 %v212_v1 }
  0x1b   :  { %199 = vmatmul.mubr.msk.bf16.vlgmr.msra.gmra.mrb[0].mxu0 %vm71_vm0, %v215_v4  ;;  %203 = vmatmul.mubr.msk.bf16.vlgmr.msra.gmra.mrb[0].mxu1 %vm71_vm0, %v216_v5 }
  0xee   :  { %v200_v7 = vpop.f32.mrb[0].mxu0  ;;  %v204_v8 = vpop.f32.mrb[0].mxu1 }
  0xef   :  { %v158_v9 = vadd.f32 %v200_v7, %v187_v6  ;;  %v162_v10 = vadd.f32 %v204_v8, %v187_v6  ;;  %v118_v11 = vpop.f32.mrb[1].mxu0  ;;  %v134_v12 = vpop.f32.mrb[1].mxu1 }
  0xf0   :  { %v156_v13 = vadd.f32 %v187_v6, %v118_v11  ;;  %v160_v14 = vadd.f32 %v187_v6, %v134_v12  ;;  %v201_v15 = vpop.f32.mrb[2].mxu0  ;;  %v205_v16 = vpop.f32.mrb[2].mxu1 }
  0xf1   :  { %166 = vst.msk [vmem:[%s331_s3 + $0x10] sm:$0xff] %vm71_vm0, %v158_v9  ;;  %170 = vst.msk [vmem:[%s331_s3 + $0x30] sm:$0xff] %vm71_vm0, %v162_v10  ;;  %v159_v17 = vadd.f32 %v201_v15, %v187_v6  ;;  %v163_v18 = vadd.f32 %v205_v16, %v187_v6  ;;  %v121_v19 = vpop.f32.mrb[3].mxu0  ;;  %v137_v20 = vpop.f32.mrb[3].mxu1 }
  0xf2   :  { %164 = vst.msk [vmem:[%s331_s3] sm:$0xff] %vm71_vm0, %v156_v13  ;;  %168 = vst.msk [vmem:[%s331_s3 + $0x20] sm:$0xff] %vm71_vm0, %v160_v14  ;;  %v157_v21 = vadd.f32 %v187_v6, %v121_v19  ;;  %v161_v22 = vadd.f32 %v187_v6, %v137_v20 }
  0xf3   :  { %167 = vst.msk [vmem:[%s331_s3 + $0x18] sm:$0xff] %vm71_vm0, %v159_v17  ;;  %171 = vst.msk [vmem:[%s331_s3 + $0x38] sm:$0xff] %vm71_vm0, %v163_v18 }
  0xf4   :  { %165 = vst.msk [vmem:[%s331_s3 + $0x8] sm:$0xff] %vm71_vm0, %v157_v21  ;;  %169 = vst.msk [vmem:[%s331_s3 + $0x28] sm:$0xff] %vm71_vm0, %v161_v22 }
  0xf5   :  { %176 = vsyncpa [#allocation3], 1 }

// kernel: decoder_forward.5
= control target key start
LH: loop header
LB: loop body
LE: loop exit
PB: predicated region body
PF: predicated region fallthrough
CT: control target
= control target key end

     0   :  { %s385_s0 = inlined_call_operand.vmem [shape: bf16[8,256], index: 0, kind: input, shape index: {}]   ;;  %s386_s1 = inlined_call_operand.vmem [shape: bf16[256,128], index: 1, kind: input, shape index: {}]   ;;  %s387_s2 = inlined_call_operand.vmem [shape: f32[1,128], index: 2, kind: input, shape index: {}]   ;;  %s388_s3 = inlined_call_operand.hbm [shape: f32[8,128], index: 3, kind: output, shape index: {}]  }
   0x1   :  { %v256_v0 = vld [vmem:[%s386_s1 + $0x40] sm:$0xff]   ;;  %v258_v2 = vld [vmem:[%s386_s1 + $0x48] sm:$0xff]   ;;  %v260_v4 = vld [vmem:[%s386_s1 + $0x50] sm:$0xff]  }
   0x2   :  { %v257_v1 = vld [vmem:[%s386_s1] sm:$0xff]   ;;  %233 = vmatprep.subr.bf16.mxu0 %v256_v0  ;;  %v259_v3 = vld [vmem:[%s386_s1 + $0x8] sm:$0xff]   ;;  %v261_v5 = vld [vmem:[%s386_s1 + $0x10] sm:$0xff]  }
   0x3   :  { %234 = vmatpush3.bf16.msra.mxu0 %v257_v1  ;;  %v262_v6 = vld [vmem:[%s386_s1 + $0x58] sm:$0xff]   ;;  %v264_v8 = vld [vmem:[%s386_s1 + $0x60] sm:$0xff]   ;;  %v266_v10 = vld [vmem:[%s386_s1 + $0x68] sm:$0xff]  }
   0x4   :  { %235 = vmatprep.subr.bf16.mxu0 %v258_v2  ;;  %v263_v7 = vld [vmem:[%s386_s1 + $0x18] sm:$0xff]   ;;  %v265_v9 = vld [vmem:[%s386_s1 + $0x20] sm:$0xff]  }
   0x5   :  { %v16_v11 = vld [vmem:[%s385_s0] sm:$0xff] }
   0x7   :  { %236 = vmatpush3.bf16.msra.mxu0 %v259_v3 }
   0x8   :  { %237 = vmatprep.subr.bf16.mxu0 %v260_v4 }
   0xb   :  { %238 = vmatpush3.bf16.msra.mxu0 %v261_v5 }
   0xc   :  { %239 = vmatprep.subr.bf16.mxu0 %v262_v6 }
   0xf   :  { %240 = vmatpush3.bf16.msra.mxu0 %v263_v7 }
  0x10   :  { %241 = vmatprep.subr.bf16.mxu0 %v264_v8 }
  0x11   :  { %8 = vsyncpa [#allocation3], 0  ;;  %v216_v12 = vcombine.high %v16_v11, %v16_v11  ;;  %v267_v13 = vld [vmem:[%s386_s1 + $0x28] sm:$0xff]   ;;  %v268_v14 = vld [vmem:[%s386_s1 + $0x70] sm:$0xff]   ;;  %v215_v18 = vcombine.low %v16_v11, %v16_v11  ;;  %s298_s20 = smov [#allocation2]  }
  0x12   :  { %v269_v15 = vld [vmem:[%s386_s1 + $0x30] sm:$0xff]   ;;  %v270_v16 = vld [vmem:[%s386_s1 + $0x78] sm:$0xff]   ;;  %v214_v21 = vld [vmem:[%s387_s2] ss:$0 sm:$0xff]  ;;  %s206_s21 = sshll.u32 %s298_s20, 4  ;;  %s207_s21 = int_to_ptr.vmem [resolvable:$true] %s206_s21 }
  0x13   :  { %242 = vmatpush3.bf16.msra.mxu0 %v265_v9  ;;  %191 = vmatprep.mubr.bf16.mxu0 %v216_v12  ;;  %v271_v17 = vld [vmem:[%s386_s1 + $0x38] sm:$0xff]   ;;  %s274_s22 = scalar_lea.vmem %s207_s21, 128  ;;  %p279_p1 = scmp.lt.s32.totalorder %s207_s21, %s207_s21 }
  0x14   :  { %243 = vmatprep.subr.bf16.mxu0 %v266_v10  ;;  %p275_p0 = scmp.ne.s32.totalorder %s207_s21, %s274_s22  ;;  %p280_p2 = scmp.lt.s32.totalorder %s274_s22, %s274_s22 }
  0x16   :  { %p281_p3 = por %p280_p2, %p279_p1 }
  0x17   :  { %244 = vmatpush3.bf16.msra.mxu0 %v267_v13 }
  0x18   :  { %245 = vmatprep.subr.bf16.mxu0 %v268_v14  ;;  %p282_p4 = pnand %p281_p3, %p275_p0 }
  0x1b   :  { %246 = vmatpush3.bf16.msra.mxu0 %v269_v15 }
  0x1c   :  { %247 = vmatprep.subr.bf16.mxu0 %v270_v16 }
  0x1f   :  { %248 = vmatpush3.bf16.msra.mxu0 %v271_v17 }
  0x22   :  { %192 = vmatmul.mubr.bf16.vlgmr.msra.gmra.mrb[0].mxu0 %v215_v18 }
  0xf5   :  { %v249_v19 = vpop.f32.mrb[0].mxu0 }
  0xf6   :  { %v250_v20 = vpop.f32.mrb[1].mxu0 }
  0xf7   :  { %v251_v22 = vadd.f32 %v250_v20, %v249_v19  ;;  %v252_v23 = vpop.f32.mrb[2].mxu0 }
  0xf8   :  { %v253_v24 = vpop.f32.mrb[3].mxu0 }
  0xf9   :  { %v194_v25 = vadd.f32 %v251_v22, %v214_v21 }
  0xfb   :  { %199 = vst [vmem:[#allocation2] sm:$0xff] %v194_v25 }
  0xfc   :  { %285 = shalt.err (!%p282_p4)
}
  0xfd   :  { %s286_s24 = scalar_lea.hbm %s388_s3, 128 }
  0xfe   :  { %p287_p5 = scmp.ne.s32.totalorder %s388_s3, %s286_s24  ;;  %p290_p6 = scmp.lt.u32.totalorder %s286_s24, %s388_s3 }
 0x100   :  { %p292_p7 = pnand %p290_p6, %p287_p5 }
 0x102   :  { %295 = shalt.err (!%p292_p7)
}
 0x103   :  { %209 = dma.vmem_to_hbm [thread:$0]  %s207_s21, 128, %s388_s3, [#allocation3]  }
 0x104   :  { %296 = dma.done.wait [#allocation3], 128  }
 0x105   :  { %297 = vsyncadd [#allocation3], 4294967168 }
 0x106   :  { %213 = vsyncpa [#allocation3], 1 }

// kernel: decoder_forward.4
= control target key start
LH: loop header
LB: loop body
LE: loop exit
PB: predicated region body
PF: predicated region fallthrough
CT: control target
= control target key end

     0   :  { %18 = vsyncpa [#allocation5], 0  ;;  %s2444_s0 = inlined_call_operand.vmem [shape: s32[8], index: 0, kind: input, shape index: {}]   ;;  %s2445_s1 = inlined_call_operand.vmem [shape: f32[64,16], index: 1, kind: input, shape index: {}]   ;;  %s2446_s2 = inlined_call_operand.vmem [shape: bf16[8,8,32], index: 2, kind: input, shape index: {}]   ;;  %s2447_s3 = inlined_call_operand.vmem [shape: f32[8,8,32], index: 3, kind: input, shape index: {}]   ;;  %s2448_s4 = inlined_call_operand.vmem [shape: f32[8,128], index: 4, kind: input, shape index: {}, may-alias: {4,10}]   ;;  %s2449_s5 = inlined_call_operand.vmem [shape: f32[8,128], index: 5, kind: input, shape index: {}, may-alias: {5,11}]   ;;  %s2450_s6 = inlined_call_operand.vmem [shape: bf16[128,32], index: 6, kind: input, shape index: {}]   ;;  %s2451_s7 = inlined_call_operand.vmem [shape: f32[1,32], index: 7, kind: input, shape index: {}]   ;;  %s2452_s8 = inlined_call_operand.vmem [shape: bf16[176,512], index: 8, kind: input, shape index: {}]   ;;  %s2453_s9 = inlined_call_operand.vmem [shape: f32[1,512], index: 9, kind: input, shape index: {}]   ;;  %s2454_s10 = inlined_call_operand.vmem [shape: f32[8,128], index: 10, kind: output, shape index: {0}, may-alias: {4,10}]   ;;  %s2455_s11 = inlined_call_operand.vmem [shape: f32[8,128], index: 11, kind: output, shape index: {1}, may-alias: {5,11}]   ;;  %s2456_s12 = inlined_call_operand.vmem [shape: bf16[8,256], index: 12, kind: output, shape index: {2}]  }
   0x1   :  { %s25_s23 = sshll.u32 %s2444_s0, 4  ;;  %s26_s23 = int_to_ptr.vmem [resolvable:$true] %s25_s23 }
   0x2   :  { %s1943_s24 = scalar_lea.vmem %s26_s23, 16  ;;  %p1948_p1 = scmp.lt.s32.totalorder %s26_s23, %s26_s23 }
   0x3   :  { %p1944_p0 = scmp.ne.s32.totalorder %s26_s23, %s1943_s24  ;;  %p1949_p2 = scmp.lt.s32.totalorder %s1943_s24, %s1943_s24 }
   0x5   :  { %p1950_p3 = por %p1949_p2, %p1948_p1 }
   0x7   :  { %p1951_p4 = pnand %p1950_p3, %p1944_p0 }
   0x9   :  { %1954 = shalt.err (!%p1951_p4)
}
   0xa   :  { %s1973_s25 = smov [#allocation4]  }
   0xb   :  { %28 = dma.vmem_to_smem %s26_s23, 16, %s1973_s25, [#allocation5]  }
   0xc   :  { %1955 = dma.done.wait [#allocation5], 16  }
   0xd   :  { %1956 = vsyncadd [#allocation5], 4294967280 }
   0xe   :  { %48 = sfence }
   0xf   :  { %s50_s26 = sld [smem:[#allocation4]]  ;;  %s1687_s27 = sld [smem:[#allocation4 + $0x1]] }
  0x10   :  { %s1688_s28 = sld [smem:[#allocation4 + $0x2]]  ;;  %s1689_s29 = sld [smem:[#allocation4 + $0x3]] }
  0x11   :  { %s1690_s30 = sld [smem:[#allocation4 + $0x4]]  ;;  %s1691_s13 = sld [smem:[#allocation4 + $0x5]] }
  0x12   :  { %s1692_s0 = sld [smem:[#allocation4 + $0x6]]  ;;  %s2048_s14 = sld [smem:[#allocation4 + $0x7]] }
  0x15   :  { %s58_s17 = scalar_lea.vmem %s2445_s1, %s50_s26 }
  0x16   :  { %v76_v0 = vld [vmem:[%s58_s17] sm:$0x1] }
  0x17   :  { %77 = vst [vmem:[#allocation2] sm:$0x1] %v76_v0 }
  0x18   :  { %102 = vsyncadd [#allocation3], 16  ;;  %s103_s20 = scalar_lea.vmem %s2445_s1, %s1687_s27 }
  0x19   :  { %v123_v1 = vld [vmem:[%s103_s20] sm:$0x1] }
  0x1a   :  { %124 = vst [vmem:[#allocation2 + $0x1] sm:$0x1] %v123_v1 }
  0x1b   :  { %149 = vsyncadd [#allocation3 + $0x1], 16  ;;  %s150_s23 = scalar_lea.vmem %s2445_s1, %s1688_s28 }
  0x1c   :  { %v170_v2 = vld [vmem:[%s150_s23] sm:$0x1] }
  0x1d   :  { %171 = vst [vmem:[#allocation2 + $0x2] sm:$0x1] %v170_v2 }
  0x1e   :  { %196 = vsyncadd [#allocation3 + $0x2], 16  ;;  %s197_s26 = scalar_lea.vmem %s2445_s1, %s1689_s29 }
  0x1f   :  { %v217_v3 = vld [vmem:[%s197_s26] sm:$0x1] }
  0x20   :  { %218 = vst [vmem:[#allocation2 + $0x3] sm:$0x1] %v217_v3 }
  0x21   :  { %243 = vsyncadd [#allocation3 + $0x3], 16  ;;  %s244_s27 = scalar_lea.vmem %s2445_s1, %s1690_s30 }
  0x22   :  { %v264_v4 = vld [vmem:[%s244_s27] sm:$0x1] }
  0x23   :  { %265 = vst [vmem:[#allocation2 + $0x4] sm:$0x1] %v264_v4 }
  0x24   :  { %290 = vsyncadd [#allocation3 + $0x4], 16  ;;  %s291_s28 = scalar_lea.vmem %s2445_s1, %s1691_s13 }
  0x25   :  { %v311_v5 = vld [vmem:[%s291_s28] sm:$0x1] }
  0x26   :  { %312 = vst [vmem:[#allocation2 + $0x5] sm:$0x1] %v311_v5 }
  0x27   :  { %337 = vsyncadd [#allocation3 + $0x5], 16  ;;  %s338_s29 = scalar_lea.vmem %s2445_s1, %s1692_s0 }
  0x28   :  { %v358_v6 = vld [vmem:[%s338_s29] sm:$0x1] }
  0x29   :  { %359 = vst [vmem:[#allocation2 + $0x6] sm:$0x1] %v358_v6 }
  0x2a   :  { %384 = vsyncadd [#allocation3 + $0x6], 16  ;;  %s385_s22 = scalar_lea.vmem %s2445_s1, %s2048_s14 }
  0x2b   :  { %v405_v7 = vld [vmem:[%s385_s22] sm:$0x1] }
  0x2c   :  { %406 = vst [vmem:[#allocation2 + $0x7] sm:$0x1] %v405_v7 }
  0x2d   :  { %431 = vsyncadd [#allocation3 + $0x7], 16  ;;  %v2078_v8 = vld [vmem:[%s2449_s5] sm:$0xff]  ;;  %v1974_v9 = vmov 0.0   ;;  %vm1975_vm0 = vmmov 0   ;;  %v1820_v11 = vld [vmem:[%s2450_s6 + $0x8] sm:$0xff]   ;;  %v568_v22 = vlaneseq }
  0x2e   :  { %1790 = vmatprep.subr.bf16.mxu0 %v1974_v9  ;;  %v1819_v10 = vld [vmem:[%s2450_s6] sm:$0xff]   ;;  %1806 = vmatprep.mubr.msk.bf16.mxu0 %vm1975_vm0, %v1974_v9  ;;  %v1821_v12 = vld [vmem:[%s2450_s6 + $0x10] sm:$0xff]   ;;  %v1822_v13 = vld [vmem:[%s2450_s6 + $0x18] sm:$0xff]   ;;  %v1976_v20 = vmov 1966171168   ;;  %vm684_vm1 = vcmask 261120  }
  0x2f   :  { %1791 = vmatpush3.bf16.msra.mxu0 %v1819_v10  ;;  %v1823_v14 = vld [vmem:[%s2450_s6 + $0x20] sm:$0xff]   ;;  %v1824_v15 = vld [vmem:[%s2450_s6 + $0x28] sm:$0xff]   ;;  %v1825_v16 = vld [vmem:[%s2450_s6 + $0x30] sm:$0xff]   ;;  %v566_v21 = vunpack.c.l.s4 %v1976_v20  ;;  %v2112_v24 = vshrl.u32 %v568_v22, 7  ;;  %vm751_vm2 = vcmask 1041409   ;;  %vm753_vm3 = vcmask 1042434  }
  0x30   :  { %1792 = vmatprep.subr.bf16.mxu0 %v1974_v9  ;;  %v1826_v17 = vld [vmem:[%s2450_s6 + $0x38] sm:$0xff]   ;;  %v2107_v18 = vld [vmem:[%s2448_s4] sm:$0xff]  ;;  %v556_v42 = vld [vmem:[%s2447_s3 + $0x8] sm:$0xff]  ;;  %vm755_vm4 = vcmask 1043459   ;;  %vm757_vm5 = vcmask 1044484   ;;  %vm759_vm6 = vcmask 1045509  }
  0x31   :  { %v450_v19 = vpack.c.bf16 %v2107_v18, %v2107_v18  ;;  %v567_v23 = vunpack.c.0.s8 %v566_v21  ;;  %v2116_v30 = vsub.s32 0, %v2112_v24  ;;  %v555_v36 = vld [vmem:[%s2447_s3] sm:$0xff]  ;;  %v557_v43 = vld [vmem:[%s2447_s3 + $0x10] sm:$0xff]  ;;  %v558_v48 = vld [vmem:[%s2447_s3 + $0x18] sm:$0xff]  ;;  %vm761_vm7 = vcmask 1046534  }
  0x32   :  { %v559_v49 = vld [vmem:[%s2447_s3 + $0x20] sm:$0xff]  ;;  %v560_v56 = vld [vmem:[%s2447_s3 + $0x28] sm:$0xff]  ;;  %v561_v60 = vld [vmem:[%s2447_s3 + $0x30] sm:$0xff]  ;;  %vm763_vm8 = vcmask 1047559   ;;  %vm766_vm9 = vcmask 64512  }
  0x33   :  { %1793 = vmatpush3.bf16.msra.mxu0 %v1820_v11  ;;  %v570_v25 = vsub.s32 %v567_v23, %v2112_v24  ;;  %v562_v1 = vld [vmem:[%s2447_s3 + $0x38] sm:$0xff]  ;;  %v1702_v4 = vld [vmem:[%s2451_s7] ss:$0 sm:$0xff] }
  0x34   :  { %1794 = vmatprep.subr.bf16.mxu0 %v1974_v9 }
  0x37   :  { %1795 = vmatpush3.bf16.msra.mxu0 %v1821_v12 }
  0x38   :  { %1796 = vmatprep.subr.bf16.mxu0 %v1974_v9 }
  0x3b   :  { %1797 = vmatpush3.bf16.msra.mxu0 %v1822_v13 }
  0x3c   :  { %1798 = vmatprep.subr.bf16.mxu0 %v1974_v9 }
  0x3f   :  { %1799 = vmatpush3.bf16.msra.mxu0 %v1823_v14 }
  0x40   :  { %1800 = vmatprep.subr.bf16.mxu0 %v1974_v9 }
  0x43   :  { %1801 = vmatpush3.bf16.msra.mxu0 %v1824_v15 }
  0x44   :  { %1802 = vmatprep.subr.bf16.mxu0 %v1974_v9 }
  0x47   :  { %1803 = vmatpush3.bf16.msra.mxu0 %v1825_v16 }
  0x48   :  { %1804 = vmatprep.subr.bf16.mxu0 %v1974_v9 }
  0x4b   :  { %1805 = vmatpush3.bf16.msra.mxu0 %v1826_v17 }
  0x4e   :  { %1807 = vmatmul.mubr.bf16.vlgmr.msra.gmra.mrb[0].mxu0 %v450_v19 }
 0x121   :  { %v549_v26 = vpop.f32.mrb[0].mxu0 }
 0x122   :  { %v564_v27 = vcombine.high %v549_v26, %v549_v26  ;;  %v571_v28 = vrot.slane %v549_v26, %v570_v25  ;;  %v1808_v29 = vpop.f32.mrb[1].mxu0 }
 0x123   :  { %v552_v31 = vpop.f32.mrb[2].mxu0 }
 0x124   :  { %v578_v32 = vrot.slane %v564_v27, %v570_v25  ;;  %v579_v33 = vcombine.high %v571_v28, %v571_v28  ;;  %v587_v34 = vrot.slane %v571_v28, %v570_v25  ;;  %v1809_v35 = vpop.f32.mrb[3].mxu0 }
 0x126   :  { %v580_v37 = vcombine.high %v578_v32, %v578_v32  ;;  %v594_v38 = vrot.slane %v578_v32, %v570_v25  ;;  %v601_v39 = vrot.slane %v579_v33, %v570_v25  ;;  %v609_v40 = vcombine.high %v587_v34, %v587_v34 }
 0x127   :  { %v616_v41 = vrot.slane %v587_v34, %v2116_v30  ;;  %v718_v34 = vand.u32 127, %v568_v22 }
 0x128   :  { %v608_v44 = vrot.slane %v580_v37, %v570_v25  ;;  %v610_v45 = vcombine.high %v594_v38, %v594_v38  ;;  %v611_v46 = vcombine.high %v601_v39, %v601_v39  ;;  %v620_v47 = vrot.slane %v601_v39, %v2116_v30 }
 0x129   :  { %v624_v50 = vrot.slane %v609_v40, %v2116_v30  ;;  %v632_v51 = vrot.slane %v594_v38, %v2116_v30  ;;  %v653_v52 = vadd.f32 %v616_v41, %v555_v36  ;;  %v2163_v36 = vsub.s32 %v718_v34, %v2112_v24 }
 0x12a   :  { %v612_v53 = vcombine.high %v608_v44, %v608_v44  ;;  %v628_v54 = vrot.slane %v611_v46, %v2116_v30  ;;  %v636_v55 = vrot.slane %v608_v44, %v2116_v30  ;;  %v640_v57 = vrot.slane %v610_v45, %v2116_v30 }
 0x12b   :  { %v654_v58 = vadd.f32 %v620_v47, %v556_v42  ;;  %v655_v59 = vadd.f32 %v624_v50, %v557_v43  ;;  %1827 = vtanh.f32 %v653_v52  ;;  %v657_v62 = vadd.f32 %v632_v51, %v559_v49 }
 0x12c   :  { %v656_v61 = vadd.f32 %v628_v54, %v558_v48  ;;  %v644_v63 = vrot.slane %v612_v53, %v2116_v30  ;;  %v658_v0 = vadd.f32 %v636_v55, %v560_v56  ;;  %v659_v2 = vadd.f32 %v640_v57, %v561_v60 }
 0x12d   :  { %1829 = vtanh.f32 %v654_v58  ;;  %v2182_v60 = vsub.s32 1, %v2112_v24 }
 0x12e   :  { %1831 = vtanh.f32 %v655_v59  ;;  %v660_v3 = vadd.f32 %v644_v63, %v562_v1  ;;  %v1977_v59 = vmov 0  }
 0x12f   :  { %1833 = vtanh.f32 %v656_v61  ;;  %1818 = vset.pattern.permute.xlu0 %v1977_v59  ;;  %1817 = vset.pattern.permute.xlu1 %v1977_v59  ;;  %v2185_v61 = vsub.s32 2, %v2112_v24 }
 0x130   :  { %1835 = vtanh.f32 %v657_v62  ;;  %v2188_v62 = vsub.s32 3, %v2112_v24 }
 0x131   :  { %1837 = vtanh.f32 %v658_v0 }
 0x132   :  { %1839 = vtanh.f32 %v659_v2 }
 0x133   :  { %1841 = vtanh.f32 %v660_v3  ;;  %v789_v3 = vsub.s32 4, %v2112_v24 }
 0x135   :  { %v1828_v5 = vpop.eup %1827 }
 0x136   :  { %v676_v6 = vmul.f32 %v1828_v5, %v1702_v4 }
 0x137   :  { %v1830_v7 = vpop.eup %1829 }
 0x138   :  { %v1832_v9 = vpop.eup %1831  ;;  %v685_v10 = vsel %vm684_vm1, %v676_v6, 0.0  ;;  %v677_v11 = vmul.f32 %v1830_v7, %v1702_v4 }
 0x139   :  { %v1834_v12 = vpop.eup %1833  ;;  %686 = vadd.xlane.f32.xlu0 %v685_v10  ;;  %v678_v13 = vmul.f32 %v1832_v9, %v1702_v4 }
 0x13a   :  { %v1836_v14 = vpop.eup %1835  ;;  %v679_v16 = vmul.f32 %v1834_v12, %v1702_v4  ;;  %v688_v19 = vsel %vm684_vm1, %v677_v11, 0.0  ;;  %v793_v11 = vsub.s32 5, %v2112_v24 }
 0x13b   :  { %v691_v15 = vsel %vm684_vm1, %v678_v13, 0.0  ;;  %v1838_v17 = vpop.eup %1837  ;;  %v680_v20 = vmul.f32 %v1836_v14, %v1702_v4 }
 0x13c   :  { %692 = vadd.xlane.f32.xlu1 %v691_v15  ;;  %v1840_v21 = vpop.eup %1839  ;;  %v694_v23 = vsel %vm684_vm1, %v679_v16, 0.0  ;;  %v681_v25 = vmul.f32 %v1838_v17, %v1702_v4  ;;  %v797_v15 = vsub.s32 6, %v2112_v24 }
 0x13d   :  { %689 = vadd.xlane.f32.xlu0 %v688_v19  ;;  %v1842_v26 = vpop.eup %1841  ;;  %v697_v27 = vsel %vm684_vm1, %v680_v20, 0.0  ;;  %v682_v28 = vmul.f32 %v1840_v21, %v1702_v4  ;;  %v801_v20 = vsub.s32 7, %v2112_v24 }
 0x13e   :  { %v700_v29 = vsel %vm684_vm1, %v681_v25, 0.0  ;;  %v683_v31 = vmul.f32 %v1842_v26, %v1702_v4 }
 0x13f   :  { %v703_v32 = vsel %vm684_vm1, %v682_v28, 0.0 }
 0x140   :  { %695 = vadd.xlane.f32.xlu1 %v694_v23  ;;  %v706_v33 = vsel %vm684_vm1, %v683_v31, 0.0 }
 0x141   :  { %698 = vadd.xlane.f32.xlu0 %v697_v27 }
 0x144   :  { %701 = vadd.xlane.f32.xlu1 %v700_v29 }
 0x145   :  { %704 = vadd.xlane.f32.xlu0 %v703_v32 }
 0x148   :  { %707 = vadd.xlane.f32.xlu1 %v706_v33 }
 0x1c6   :  { %v687_v35 = vpop.xlane.xlu0 %686 }
 0x1c7   :  { %v722_v39 = vrot.slane %v687_v35, %v2163_v36 }
 0x1c9   :  { %v693_v37 = vpop.xlane.xlu1 %692 }
 0x1ca   :  { %v690_v38 = vpop.xlane.xlu0 %689  ;;  %v730_v41 = vrot.slane %v693_v37, %v2163_v36 }
 0x1cb   :  { %v726_v40 = vrot.slane %v690_v38, %v2163_v36 }
 0x1cd   :  { %v752_v42 = vsel %vm751_vm2, %v726_v40, %v722_v39  ;;  %v696_v43 = vpop.xlane.xlu1 %695 }
 0x1ce   :  { %v754_v22 = vsel %vm753_vm3, %v730_v41, %v752_v42  ;;  %v734_v44 = vrot.slane %v696_v43, %v2163_v36  ;;  %v699_v45 = vpop.xlane.xlu0 %698 }
 0x1cf   :  { %v738_v46 = vrot.slane %v699_v45, %v2163_v36 }
 0x1d0   :  { %v756_v47 = vsel %vm755_vm4, %v734_v44, %v754_v22 }
 0x1d1   :  { %v758_v48 = vsel %vm757_vm5, %v738_v46, %v756_v47  ;;  %v702_v49 = vpop.xlane.xlu1 %701 }
 0x1d2   :  { %v742_v50 = vrot.slane %v702_v49, %v2163_v36  ;;  %v705_v51 = vpop.xlane.xlu0 %704 }
 0x1d3   :  { %v746_v52 = vrot.slane %v705_v51, %v2163_v36 }
 0x1d4   :  { %v760_v53 = vsel %vm759_vm6, %v742_v50, %v758_v48 }
 0x1d5   :  { %v708_v54 = vpop.xlane.xlu1 %707  ;;  %v762_v55 = vsel %vm761_vm7, %v746_v52, %v760_v53 }
 0x1d6   :  { %v750_v56 = vrot.slane %v708_v54, %v2163_v36 }
 0x1d8   :  { %v764_v57 = vsel %vm763_vm8, %v750_v56, %v762_v55 }
 0x1d9   :  { %v767_v58 = vsel %vm766_vm9, %v764_v57, -inf }
 0x1da   :  { %768 = vmax.xlane.f32.xlu0 %v767_v58 }
 0x267   :  { %v769_v63 = vpop.xlane.xlu0 %768 }
 0x268   :  { %v774_v0 = vrot.slane %v769_v63, %v2116_v30  ;;  %v778_v1 = vrot.slane %v769_v63, %v2182_v60  ;;  %v782_v2 = vrot.slane %v769_v63, %v2185_v61  ;;  %v786_v4 = vrot.slane %v769_v63, %v2188_v62 }
 0x269   :  { %v790_v12 = vrot.slane %v769_v63, %v789_v3  ;;  %v794_v16 = vrot.slane %v769_v63, %v793_v11  ;;  %v798_v21 = vrot.slane %v769_v63, %v797_v15  ;;  %v802_v28 = vrot.slane %v769_v63, %v801_v20 }
 0x26a   :  { %v811_v5 = vsub.f32 %v687_v35, %v774_v0  ;;  %v812_v6 = vsub.f32 %v690_v38, %v778_v1  ;;  %v813_v7 = vsub.f32 %v693_v37, %v782_v2  ;;  %v814_v13 = vsub.f32 %v696_v43, %v786_v4 }
 0x26b   :  { %v815_v17 = vsub.f32 %v699_v45, %v790_v12  ;;  %v816_v23 = vsub.f32 %v702_v49, %v794_v16  ;;  %v817_v29 = vsub.f32 %v705_v51, %v798_v21  ;;  %v818_v33 = vsub.f32 %v708_v54, %v802_v28 }
 0x26c   :  { %v819_v9 = vmul.f32 1.442695, %v811_v5  ;;  %v821_v10 = vmul.f32 1.442695, %v812_v6  ;;  %v823_v14 = vmul.f32 1.442695, %v813_v7 }
 0x26d   :  { %v825_v19 = vmul.f32 1.442695, %v814_v13  ;;  %v827_v25 = vmul.f32 1.442695, %v815_v17  ;;  %v829_v31 = vmul.f32 1.442695, %v816_v23 }
 0x26e   :  { %1843 = vpow2.f32 %v819_v9  ;;  %v831_v34 = vmul.f32 1.442695, %v817_v29  ;;  %v833_v37 = vmul.f32 1.442695, %v818_v33 }
 0x26f   :  { %1845 = vpow2.f32 %v821_v10 }
 0x270   :  { %1847 = vpow2.f32 %v823_v14 }
 0x271   :  { %1849 = vpow2.f32 %v825_v19 }
 0x272   :  { %1851 = vpow2.f32 %v827_v25 }
 0x273   :  { %1853 = vpow2.f32 %v829_v31 }
 0x274   :  { %1855 = vpow2.f32 %v831_v34 }
 0x275   :  { %1857 = vpow2.f32 %v833_v37 }
 0x278   :  { %v1844_v26 = vpop.eup %1843 }
 0x279   :  { %v1846_v27 = vpop.eup %1845  ;;  %844 = vperm.xlu1 %1817, %v1844_v26  }
 0x27a   :  { %847 = vperm.xlu0 %1818, %v1846_v27   ;;  %v1848_v32 = vpop.eup %1847 }
 0x27b   :  { %v1850_v35 = vpop.eup %1849 }
 0x27c   :  { %v1852_v38 = vpop.eup %1851 }
 0x27d   :  { %850 = vperm.xlu1 %1817, %v1848_v32   ;;  %v1854_v39 = vpop.eup %1853 }
 0x27e   :  { %v1856_v40 = vpop.eup %1855 }
 0x27f   :  { %v1858_v41 = vpop.eup %1857 }
 0x281   :  { %853 = vperm.xlu1 %1817, %v1850_v35  }
 0x285   :  { %856 = vperm.xlu1 %1817, %v1852_v38  }
 0x289   :  { %859 = vperm.xlu1 %1817, %v1854_v39  }
 0x28d   :  { %862 = vperm.xlu1 %1817, %v1856_v40  }
 0x291   :  { %865 = vperm.xlu1 %1817, %v1858_v41  }
 0x2f8   :  { %v845_v42 = vpop.permute.xlu1 %844 }
 0x2f9   :  { %v848_v45 = vpop.permute.xlu0 %847  ;;  %v870_v48 = vrot.slane %v845_v42, %v2163_v36 }
 0x2fa   :  { %v874_v47 = vrot.slane %v848_v45, %v2163_v36  ;;  %v1779_v45 = vld [vmem:[%s2446_s2 + $0x10] sm:$0xff]  }
 0x2fc   :  { %v851_v43 = vpop.permute.xlu1 %850  ;;  %v899_v53 = vsel %vm751_vm2, %v874_v47, %v870_v48 }
 0x2fd   :  { %v878_v49 = vrot.slane %v851_v43, %v2163_v36 }
 0x2ff   :  { %v900_v55 = vsel %vm753_vm3, %v878_v49, %v899_v53 }
 0x300   :  { %v854_v22 = vpop.permute.xlu1 %853 }
 0x301   :  { %v882_v50 = vrot.slane %v854_v22, %v2163_v36 }
 0x303   :  { %v901_v57 = vsel %vm755_vm4, %v882_v50, %v900_v55 }
 0x304   :  { %v857_v44 = vpop.permute.xlu1 %856 }
 0x305   :  { %v886_v51 = vrot.slane %v857_v44, %v2163_v36 }
 0x307   :  { %v902_v58 = vsel %vm757_vm5, %v886_v51, %v901_v57 }
 0x308   :  { %v860_v46 = vpop.permute.xlu1 %859 }
 0x309   :  { %v890_v54 = vrot.slane %v860_v46, %v2163_v36 }
 0x30b   :  { %v903_v63 = vsel %vm759_vm6, %v890_v54, %v902_v58 }
 0x30c   :  { %v863_v52 = vpop.permute.xlu1 %862 }
 0x30d   :  { %v894_v56 = vrot.slane %v863_v52, %v2163_v36  ;;  %v1772_v52 = vunpack.c.l.bf16 %v1779_v45 }
 0x30f   :  { %v904_v1 = vsel %vm761_vm7, %v894_v56, %v903_v63 }
 0x310   :  { %v866_v59 = vpop.permute.xlu1 %865 }
 0x311   :  { %v898_v0 = vrot.slane %v866_v59, %v2163_v36 }
 0x313   :  { %v905_v2 = vsel %vm763_vm8, %v898_v0, %v904_v1  ;;  %v1773_v1 = vunpack.c.h.bf16 %v1779_v45 }
 0x314   :  { %v907_v4 = vsel %vm766_vm9, %v905_v2, 0.0 }
 0x315   :  { %908 = vadd.xlane.f32.xlu1 %v907_v4 }
 0x3a2   :  { %v909_v5 = vpop.xlane.xlu1 %908 }
 0x3a3   :  { %1859 = vrcp.f32 %v909_v5 }
 0x3ad   :  { %v1860_v6 = vpop.eup %1859 }
 0x3ae   :  { %v915_v7 = vrot.slane %v1860_v6, %v2116_v30  ;;  %v919_v10 = vrot.slane %v1860_v6, %v2182_v60  ;;  %v923_v13 = vrot.slane %v1860_v6, %v2185_v61  ;;  %v927_v14 = vrot.slane %v1860_v6, %v2188_v62 }
 0x3af   :  { %v931_v17 = vrot.slane %v1860_v6, %v789_v3  ;;  %v935_v21 = vrot.slane %v1860_v6, %v793_v11  ;;  %v939_v25 = vrot.slane %v1860_v6, %v797_v15  ;;  %v1763_v3 = vld [vmem:[%s2446_s2] sm:$0xff]   ;;  %v1778_v15 = vld [vmem:[%s2446_s2 + $0x8] sm:$0xff]  }
 0x3b0   :  { %v952_v9 = vmul.f32 %v1844_v26, %v915_v7  ;;  %v953_v12 = vmul.f32 %v1846_v27, %v919_v10  ;;  %v954_v36 = vmul.f32 %v1848_v32, %v923_v13  ;;  %v955_v16 = vmul.f32 %v1850_v35, %v927_v14 }
 0x3b1   :  { %v956_v19 = vmul.f32 %v1852_v38, %v931_v17  ;;  %v957_v23 = vmul.f32 %v1854_v39, %v935_v21  ;;  %v958_v26 = vmul.f32 %v1856_v40, %v939_v25  ;;  %v943_v27 = vrot.slane %v1860_v6, %v801_v20  ;;  %v1780_v6 = vld [vmem:[%s2446_s2 + $0x18] sm:$0xff]  }
 0x3b2   :  { %962 = vperm.xlu0 %1818, %v952_v9   ;;  %v1764_v29 = vunpack.c.l.bf16 %v1763_v3  ;;  %v1765_v32 = vunpack.c.h.bf16 %v1763_v3  ;;  %v1768_v35 = vunpack.c.l.bf16 %v1778_v15  ;;  %v1769_v43 = vunpack.c.h.bf16 %v1778_v15 }
 0x3b3   :  { %v959_v28 = vmul.f32 %v1858_v41, %v943_v27  ;;  %v1776_v14 = vunpack.c.l.bf16 %v1780_v6  ;;  %v1777_v3 = vunpack.c.h.bf16 %v1780_v6 }
 0x3b6   :  { %967 = vperm.xlu0 %1818, %v953_v12  }
 0x3ba   :  { %972 = vperm.xlu0 %1818, %v954_v36  }
 0x3be   :  { %977 = vperm.xlu0 %1818, %v955_v16  }
 0x3c2   :  { %982 = vperm.xlu0 %1818, %v956_v19  }
 0x3c6   :  { %987 = vperm.xlu0 %1818, %v957_v23  }
 0x3ca   :  { %992 = vperm.xlu0 %1818, %v958_v26  }
 0x3ce   :  { %997 = vperm.xlu0 %1818, %v959_v28  }
 0x431   :  { %v963_v31 = vpop.permute.xlu0 %962 }
 0x432   :  { %v1000_v11 = vmul.f32 %v1764_v29, %v963_v31 }
 0x434   :  { %v1008_v33 = vsel %vm684_vm1, %v1000_v11, 0.0 }
 0x435   :  { %v1009_v34 = vrot.slane %v1008_v33, 4  ;;  %v968_v24 = vpop.permute.xlu0 %967 }
 0x436   :  { %v1001_v20 = vmul.f32 %v1765_v32, %v968_v24 }
 0x437   :  { %v1010_v37 = vadd.f32 %v1009_v34, %v1008_v33 }
 0x438   :  { %v1015_v38 = vsel %vm684_vm1, %v1001_v20, 0.0 }
 0x439   :  { %v1011_v39 = vrot.slane %v1010_v37, 2  ;;  %v1016_v40 = vrot.slane %v1015_v38, 4  ;;  %v973_v41 = vpop.permute.xlu0 %972 }
 0x43a   :  { %v1002_v42 = vmul.f32 %v1768_v35, %v973_v41 }
 0x43b   :  { %v1012_v22 = vadd.f32 %v1011_v39, %v1010_v37  ;;  %v1017_v44 = vadd.f32 %v1016_v40, %v1015_v38 }
 0x43c   :  { %v1022_v46 = vsel %vm684_vm1, %v1002_v42, 0.0 }
 0x43d   :  { %v1013_v47 = vrot.slane %v1012_v22, 1  ;;  %v1018_v48 = vrot.slane %v1017_v44, 2  ;;  %v1023_v49 = vrot.slane %v1022_v46, 4  ;;  %v978_v50 = vpop.permute.xlu0 %977 }
 0x43e   :  { %v1003_v51 = vmul.f32 %v1769_v43, %v978_v50 }
 0x43f   :  { %v2246_v53 = vadd.f32 %v1013_v47, %v1012_v22  ;;  %v1019_v54 = vadd.f32 %v1018_v48, %v1017_v44  ;;  %v1024_v55 = vadd.f32 %v1023_v49, %v1022_v46 }
 0x440   :  { %v1029_v56 = vsel %vm684_vm1, %v1003_v51, 0.0 }
 0x441   :  { %v1020_v57 = vrot.slane %v1019_v54, 1  ;;  %v1025_v58 = vrot.slane %v1024_v55, 2  ;;  %v1030_v59 = vrot.slane %v1029_v56, 4  ;;  %v983_v63 = vpop.permute.xlu0 %982 }
 0x442   :  { %v1004_v0 = vmul.f32 %v1772_v52, %v983_v63 }
 0x443   :  { %v2249_v2 = vadd.f32 %v1020_v57, %v1019_v54  ;;  %v1026_v4 = vadd.f32 %v1025_v58, %v1024_v55  ;;  %v1031_v5 = vadd.f32 %v1030_v59, %v1029_v56 }
 0x444   :  { %v1036_v7 = vsel %vm684_vm1, %v1004_v0, 0.0 }
 0x445   :  { %v1027_v9 = vrot.slane %v1026_v4, 1  ;;  %v1032_v10 = vrot.slane %v1031_v5, 2  ;;  %v1037_v12 = vrot.slane %v1036_v7, 4  ;;  %v988_v13 = vpop.permute.xlu0 %987 }
 0x446   :  { %v1005_v36 = vmul.f32 %v1773_v1, %v988_v13 }
 0x447   :  { %v2255_v16 = vadd.f32 %v1027_v9, %v1026_v4  ;;  %v1033_v17 = vadd.f32 %v1032_v10, %v1031_v5  ;;  %v1038_v19 = vadd.f32 %v1037_v12, %v1036_v7 }
 0x448   :  { %v1043_v21 = vsel %vm684_vm1, %v1005_v36, 0.0 }
 0x449   :  { %v1034_v23 = vrot.slane %v1033_v17, 1  ;;  %v1039_v25 = vrot.slane %v1038_v19, 2  ;;  %v1044_v26 = vrot.slane %v1043_v21, 4  ;;  %v993_v27 = vpop.permute.xlu0 %992 }
 0x44a   :  { %v1006_v28 = vmul.f32 %v1776_v14, %v993_v27 }
 0x44b   :  { %v2258_v29 = vadd.f32 %v1034_v23, %v1033_v17  ;;  %v1040_v31 = vadd.f32 %v1039_v25, %v1038_v19  ;;  %v1045_v11 = vadd.f32 %v1044_v26, %v1043_v21 }
 0x44c   :  { %v1050_v32 = vsel %vm684_vm1, %v1006_v28, 0.0 }
 0x44d   :  { %v1041_v15 = vrot.slane %v1040_v31, 1  ;;  %v1046_v33 = vrot.slane %v1045_v11, 2  ;;  %v1051_v34 = vrot.slane %v1050_v32, 4  ;;  %v998_v24 = vpop.permute.xlu0 %997 }
 0x44e   :  { %v1007_v20 = vmul.f32 %v1777_v3, %v998_v24 }
 0x44f   :  { %v2261_v35 = vadd.f32 %v1041_v15, %v1040_v31  ;;  %v1047_v37 = vadd.f32 %v1046_v33, %v1045_v11  ;;  %v1052_v38 = vadd.f32 %v1051_v34, %v1050_v32 }
 0x450   :  { %v1057_v39 = vsel %vm684_vm1, %v1007_v20, 0.0 }
 0x451   :  { %v1048_v40 = vrot.slane %v1047_v37, 1  ;;  %v1053_v41 = vrot.slane %v1052_v38, 2  ;;  %v1058_v42 = vrot.slane %v1057_v39, 4 }
 0x453   :  { %v2264_v43 = vadd.f32 %v1048_v40, %v1047_v37  ;;  %v1054_v22 = vadd.f32 %v1053_v41, %v1052_v38  ;;  %v1059_v44 = vadd.f32 %v1058_v42, %v1057_v39 }
 0x455   :  { %v1055_v45 = vrot.slane %v1054_v22, 1  ;;  %v1060_v46 = vrot.slane %v1059_v44, 2 }
 0x457   :  { %v2266_v47 = vadd.f32 %v1055_v45, %v1054_v22  ;;  %v1061_v48 = vadd.f32 %v1060_v46, %v1059_v44 }
 0x459   :  { %v1062_v49 = vrot.slane %v1061_v48, 1 }
 0x45b   :  { %v2268_v50 = vadd.f32 %v1062_v49, %v1061_v48 }
 0x45c   :  { %1957 = dma.done.wait [#allocation3], 16 }
 0x45d   :  { %1958 = vsyncadd [#allocation3], 4294967280 }
 0x45e   :  { %1959 = dma.done.wait [#allocation3 + $0x1], 16 }
 0x45f   :  { %1960 = vsyncadd [#allocation3 + $0x1], 4294967280 }
 0x460   :  { %1961 = dma.done.wait [#allocation3 + $0x2], 16 }
 0x461   :  { %1962 = vsyncadd [#allocation3 + $0x2], 4294967280 }
 0x462   :  { %1963 = dma.done.wait [#allocation3 + $0x3], 16 }
 0x463   :  { %1964 = vsyncadd [#allocation3 + $0x3], 4294967280 }
 0x464   :  { %1965 = dma.done.wait [#allocation3 + $0x4], 16 }
 0x465   :  { %1966 = vsyncadd [#allocation3 + $0x4], 4294967280 }
 0x466   :  { %1967 = dma.done.wait [#allocation3 + $0x5], 16 }
 0x467   :  { %1968 = vsyncadd [#allocation3 + $0x5], 4294967280 }
 0x468   :  { %1969 = dma.done.wait [#allocation3 + $0x6], 16 }
 0x469   :  { %1970 = vsyncadd [#allocation3 + $0x6], 4294967280 }
 0x46a   :  { %1971 = dma.done.wait [#allocation3 + $0x7], 16 }
 0x46b   :  { %1972 = vsyncadd [#allocation3 + $0x7], 4294967280  ;;  %v1081_v51 = vld [vmem:[#allocation2] sm:$0xff]  ;;  %s1978_s2 = smov 32   ;;  %v1863_v54 = vld [vmem:[%s2452_s8 + $0xc] ss:$16 sps:$4 sm:$0xff]   ;;  %v1090_v22 = vsel %vm751_vm2, %v2249_v2, %v2246_v53 }
 0x46c   :  { %1099 = vrot.lane.b32.xlu0 %v1081_v51, %s1978_s2  ;;  %v1861_v52 = vld [vmem:[%s2452_s8 + $0x4] ss:$16 sps:$4 sm:$0xff]   ;;  %v1865_v55 = vld [vmem:[%s2452_s8] ss:$16 sps:$4 sm:$0xff]   ;;  %v1866_v56 = vld [vmem:[%s2452_s8 + $0x8] ss:$16 sps:$4 sm:$0xff]   ;;  %1441 = vmatprep.subr.bf16.mxu0 %v1863_v54  ;;  %v1091_v44 = vsel %vm753_vm3, %v2255_v16, %v1090_v22 }
 0x46d   :  { %1400 = vmatprep.subr.bf16.mxu1 %v1861_v52  ;;  %v1867_v57 = vld [vmem:[%s2452_s8 + $0x24] ss:$16 sps:$4 sm:$0xff]   ;;  %v1869_v58 = vld [vmem:[%s2452_s8 + $0x2c] ss:$16 sps:$4 sm:$0xff]   ;;  %s1979_s16 = smov 48   ;;  %1442 = vmatpush1.bf16.msra.mxu0 %v1866_v56  ;;  %v1092_v45 = vsel %vm755_vm4, %v2258_v29, %v1091_v44  ;;  %vm1107_vm10 = vcmask 392192  }
 0x46e   :  { %1401 = vmatpush1.bf16.msra.mxu1 %v1865_v55  ;;  %v1871_v59 = vld [vmem:[%s2452_s8 + $0x20] ss:$16 sps:$4 sm:$0xff]   ;;  %v1872_v63 = vld [vmem:[%s2452_s8 + $0x28] ss:$16 sps:$4 sm:$0xff]   ;;  %1443 = vmatprep.subr.bf16.mxu0 %v1869_v58  ;;  %v1873_v0 = vld [vmem:[%s2452_s8 + $0x44] ss:$16 sps:$4 sm:$0xff]   ;;  %v1093_v46 = vsel %vm757_vm5, %v2261_v35, %v1092_v45 }
 0x46f   :  { %1402 = vmatprep.subr.bf16.mxu1 %v1867_v57  ;;  %v1875_v1 = vld [vmem:[%s2452_s8 + $0x4c] ss:$16 sps:$4 sm:$0xff]   ;;  %v1878_v4 = vld [vmem:[%s2452_s8 + $0x48] ss:$16 sps:$4 sm:$0xff]   ;;  %v1879_v5 = vld [vmem:[%s2452_s8 + $0x64] ss:$16 sps:$4 sm:$0xff]   ;;  %v1094_v48 = vsel %vm759_vm6, %v2264_v43, %v1093_v46 }
 0x470   :  { %1103 = vrot.lane.b32.xlu0 %v2107_v18, %s1979_s16  ;;  %v1877_v18 = vld [vmem:[%s2452_s8 + $0x40] ss:$16 sps:$4 sm:$0xff]   ;;  %v1881_v6 = vld [vmem:[%s2452_s8 + $0x6c] ss:$16 sps:$4 sm:$0xff]   ;;  %v1884_v9 = vld [vmem:[%s2452_s8 + $0x68] ss:$16 sps:$4 sm:$0xff]   ;;  %v1095_v49 = vsel %vm761_vm7, %v2266_v47, %v1094_v48 }
 0x471   :  { %1444 = vmatpush1.bf16.msra.mxu0 %v1872_v63  ;;  %v1883_v7 = vld [vmem:[%s2452_s8 + $0x60] ss:$16 sps:$4 sm:$0xff]   ;;  %v1885_v10 = vld [vmem:[%s2452_s8 + $0x84] ss:$16 sps:$4 sm:$0xff]   ;;  %v1887_v12 = vld [vmem:[%s2452_s8 + $0x8c] ss:$16 sps:$4 sm:$0xff]   ;;  %v1096_v52 = vsel %vm763_vm8, %v2268_v50, %v1095_v49 }
 0x472   :  { %1403 = vmatpush1.bf16.msra.mxu1 %v1871_v59  ;;  %1445 = vmatprep.subr.bf16.mxu0 %v1875_v1  ;;  %v1889_v13 = vld [vmem:[%s2452_s8 + $0x80] ss:$16 sps:$4 sm:$0xff]   ;;  %v1890_v36 = vld [vmem:[%s2452_s8 + $0x88] ss:$16 sps:$4 sm:$0xff]   ;;  %v1891_v14 = vld [vmem:[%s2452_s8 + $0xa4] ss:$16 sps:$4 sm:$0xff]  }
 0x473   :  { %1404 = vmatprep.subr.bf16.mxu1 %v1873_v0  ;;  %v1893_v17 = vld [vmem:[%s2452_s8 + $0xac] ss:$16 sps:$4 sm:$0xff]   ;;  %v1895_v19 = vld [vmem:[%s2452_s8 + $0xa0] ss:$16 sps:$4 sm:$0xff]   ;;  %v1896_v21 = vld [vmem:[%s2452_s8 + $0xa8] ss:$16 sps:$4 sm:$0xff]  }
 0x474   :  { %v1897_v23 = vld [vmem:[%s2452_s8 + $0xc4] ss:$16 sps:$4 sm:$0xff]   ;;  %v1899_v25 = vld [vmem:[%s2452_s8 + $0xcc] ss:$16 sps:$4 sm:$0xff]   ;;  %v1901_v26 = vld [vmem:[%s2452_s8 + $0xc0] ss:$16 sps:$4 sm:$0xff]  }
 0x475   :  { %1446 = vmatpush1.bf16.msra.mxu0 %v1878_v4  ;;  %v1902_v27 = vld [vmem:[%s2452_s8 + $0xc8] ss:$16 sps:$4 sm:$0xff]   ;;  %v1903_v28 = vld [vmem:[%s2452_s8 + $0xe4] ss:$16 sps:$4 sm:$0xff]   ;;  %v1905_v3 = vld [vmem:[%s2452_s8 + $0xec] ss:$16 sps:$4 sm:$0xff]  }
 0x476   :  { %1405 = vmatpush1.bf16.msra.mxu1 %v1877_v18  ;;  %1447 = vmatprep.subr.bf16.mxu0 %v1881_v6  ;;  %v1907_v31 = vld [vmem:[%s2452_s8 + $0xe0] ss:$16 sps:$4 sm:$0xff]   ;;  %v1908_v11 = vld [vmem:[%s2452_s8 + $0xe8] ss:$16 sps:$4 sm:$0xff]   ;;  %v1909_v32 = vld [vmem:[%s2452_s8 + $0x104] ss:$16 sps:$4 sm:$0xff]  }
 0x477   :  { %1406 = vmatprep.subr.bf16.mxu1 %v1879_v5  ;;  %v1911_v15 = vld [vmem:[%s2452_s8 + $0x10c] ss:$16 sps:$4 sm:$0xff]   ;;  %v1913_v33 = vld [vmem:[%s2452_s8 + $0x100] ss:$16 sps:$4 sm:$0xff]   ;;  %v1914_v34 = vld [vmem:[%s2452_s8 + $0x108] ss:$16 sps:$4 sm:$0xff]  }
 0x478   :  { %v1915_v24 = vld [vmem:[%s2452_s8 + $0x124] ss:$16 sps:$4 sm:$0xff]   ;;  %v1917_v20 = vld [vmem:[%s2452_s8 + $0x12c] ss:$16 sps:$4 sm:$0xff]   ;;  %v1919_v37 = vld [vmem:[%s2452_s8 + $0x120] ss:$16 sps:$4 sm:$0xff]  }
 0x479   :  { %1448 = vmatpush1.bf16.msra.mxu0 %v1884_v9  ;;  %v1920_v38 = vld [vmem:[%s2452_s8 + $0x128] ss:$16 sps:$4 sm:$0xff]   ;;  %v1921_v39 = vld [vmem:[%s2452_s8 + $0x144] ss:$16 sps:$4 sm:$0xff]   ;;  %v1923_v40 = vld [vmem:[%s2452_s8 + $0x14c] ss:$16 sps:$4 sm:$0xff]  }
 0x47a   :  { %1407 = vmatpush1.bf16.msra.mxu1 %v1883_v7  ;;  %1449 = vmatprep.subr.bf16.mxu0 %v1887_v12  ;;  %v1925_v41 = vld [vmem:[%s2452_s8 + $0x140] ss:$16 sps:$4 sm:$0xff]   ;;  %v1926_v42 = vld [vmem:[%s2452_s8 + $0x148] ss:$16 sps:$4 sm:$0xff]  }
 0x47b   :  { %1408 = vmatprep.subr.bf16.mxu1 %v1885_v10  ;;  %v1155_v35 = vld [vmem:[%s2453_s9] sm:$0xf] }
 0x47c   :  { %v1160_v43 = vrot.slane %v1155_v35, %v2116_v30  ;;  %v1164_v47 = vrot.slane %v1155_v35, %v2182_v60  ;;  %v1172_v6 = vrot.slane %v1155_v35, %v2188_v62  ;;  %v1168_v30 = vrot.slane %v1155_v35, %v2185_v61 }
 0x47d   :  { %1450 = vmatpush1.bf16.msra.mxu0 %v1890_v36 }
 0x47e   :  { %1409 = vmatpush1.bf16.msra.mxu1 %v1889_v13  ;;  %1451 = vmatprep.subr.bf16.mxu0 %v1893_v17 }
 0x47f   :  { %1410 = vmatprep.subr.bf16.mxu1 %v1891_v14 }
 0x481   :  { %1452 = vmatpush1.bf16.msra.mxu0 %v1896_v21 }
 0x482   :  { %1411 = vmatpush1.bf16.msra.mxu1 %v1895_v19  ;;  %1453 = vmatprep.subr.bf16.mxu0 %v1899_v25 }
 0x483   :  { %1412 = vmatprep.subr.bf16.mxu1 %v1897_v23 }
 0x485   :  { %1454 = vmatpush1.bf16.msra.mxu0 %v1902_v27 }
 0x486   :  { %1413 = vmatpush1.bf16.msra.mxu1 %v1901_v26  ;;  %1455 = vmatprep.subr.bf16.mxu0 %v1905_v3 }
 0x487   :  { %1414 = vmatprep.subr.bf16.mxu1 %v1903_v28 }
 0x489   :  { %1456 = vmatpush1.bf16.msra.mxu0 %v1908_v11 }
 0x48a   :  { %1415 = vmatpush1.bf16.msra.mxu1 %v1907_v31  ;;  %1457 = vmatprep.subr.bf16.mxu0 %v1911_v15 }
 0x48b   :  { %1416 = vmatprep.subr.bf16.mxu1 %v1909_v32 }
 0x48d   :  { %1458 = vmatpush1.bf16.msra.mxu0 %v1914_v34 }
 0x48e   :  { %1417 = vmatpush1.bf16.msra.mxu1 %v1913_v33  ;;  %1459 = vmatprep.subr.bf16.mxu0 %v1917_v20 }
 0x48f   :  { %1418 = vmatprep.subr.bf16.mxu1 %v1915_v24 }
 0x491   :  { %1460 = vmatpush1.bf16.msra.mxu0 %v1920_v38 }
 0x492   :  { %1419 = vmatpush1.bf16.msra.mxu1 %v1919_v37  ;;  %1461 = vmatprep.subr.bf16.mxu0 %v1923_v40 }
 0x493   :  { %1420 = vmatprep.subr.bf16.mxu1 %v1921_v39 }
 0x495   :  { %1462 = vmatpush1.bf16.msra.mxu0 %v1926_v42 }
 0x496   :  { %1421 = vmatpush1.bf16.msra.mxu1 %v1925_v41 }
 0x4de   :  { %v1100_v51 = vpop.permute.xlu0 %1099 }
 0x4df   :  { %v1106_v53 = vsel %vm684_vm1, %v1096_v52, %v1100_v51 }
 0x4e2   :  { %v1104_v2 = vpop.permute.xlu0 %1103 }
 0x4e3   :  { %v1108_v16 = vsel %vm1107_vm10, %v1106_v53, %v1104_v2  ;;  %v1110_v29 = vpack.c.bf16 %v1104_v2, %v1104_v2 }
 0x4e4   :  { %v1109_v54 = vpack.c.bf16 %v1108_v16, %v1108_v16 }
 0x4e5   :  { %1747 = vmatprep.mubr.msk.bf16.mxu1 %vm1107_vm10, %v1110_v29  ;;  %1748 = vmatprep.mubr.msk.bf16.mxu0 %vm1107_vm10, %v1110_v29 }
 0x4e6   :  { %1433 = vmatmul.mubr.bf16.vlgmr.msra.gmra.mrb[0].mxu1 %v1109_v54  ;;  %1474 = vmatmul.mubr.bf16.vlgmr.msra.gmra.mrb[4].mxu0 %v1109_v54 }
 0x5b9   :  { %v1434_v50 = vpop.f32.mrb[0].mxu1  ;;  %v1475_v55 = vpop.f32.mrb[4].mxu0 }
 0x5ba   :  { %v1435_v56 = vadd.f32 %v1434_v50, %v1160_v43  ;;  %v1436_v57 = vpop.f32.mrb[1].mxu1  ;;  %v1477_v58 = vpop.f32.mrb[5].mxu0  ;;  %v1476_v9 = vadd.f32 %v1475_v55, %v1168_v30 }
 0x5bb   :  { %v1437_v59 = vadd.f32 %v1436_v57, %v1164_v47  ;;  %v1438_v63 = vpop.f32.mrb[2].mxu1  ;;  %v1479_v0 = vpop.f32.mrb[6].mxu0  ;;  %v1478_v7 = vadd.f32 %v1477_v58, %v1172_v6 }
 0x5bc   :  { %v1749_v1 = vmul.f32 -1.442695, %v1435_v56  ;;  %v1439_v18 = vpop.f32.mrb[3].mxu1  ;;  %v1480_v4 = vpop.f32.mrb[7].mxu0 }
 0x5bd   :  { %v1750_v5 = vmul.f32 -1.442695, %v1437_v59  ;;  %v1751_v60 = vmul.f32 -1.442695, %v1478_v7 }
 0x5be   :  { %1927 = vpow2.f32 %v1749_v1 }
 0x5bf   :  { %1929 = vpow2.f32 %v1750_v5 }
 0x5c0   :  { %1931 = vpow2.f32 %v1751_v60 }
 0x5c1   :  { %1933 = vtanh.f32 %v1476_v9 }
 0x5c8   :  { %v1928_v10 = vpop.eup %1927 }
 0x5c9   :  { %v1930_v12 = vpop.eup %1929  ;;  %v1485_v13 = vadd.f32 1.0, %v1928_v10 }
 0x5ca   :  { %v1491_v36 = vadd.f32 1.0, %v1930_v12  ;;  %v1932_v14 = vpop.eup %1931 }
 0x5cb   :  { %1935 = vrcp.f32 %v1485_v13  ;;  %v1934_v17 = vpop.eup %1933  ;;  %v1498_v23 = vadd.f32 1.0, %v1932_v14 }
 0x5cc   :  { %1937 = vrcp.f32 %v1491_v36 }
 0x5cd   :  { %1939 = vrcp.f32 %v1498_v23 }
 0x5d5   :  { %v1936_v19 = vpop.eup %1935 }
 0x5d6   :  { %v1938_v21 = vpop.eup %1937  ;;  %v1502_v62 = vmul.f32 %v1936_v19, %v1934_v17 }
 0x5d7   :  { %v1501_v25 = vmul.f32 %v1938_v21, %v2078_v8  ;;  %v1940_v61 = vpop.eup %1939 }
 0x5d9   :  { %v1503_v26 = vadd.f32 %v1502_v62, %v1501_v25 }
 0x5db   :  { %1941 = vtanh.f32 %v1503_v26  ;;  %1507 = vst [vmem:[%s2455_s11] sm:$0xff] %v1503_v26 }
 0x5e5   :  { %v1942_v27 = vpop.eup %1941 }
 0x5e6   :  { %v1505_v28 = vmul.f32 %v1942_v27, %v1940_v61 }
 0x5e8   :  { %1509 = vrot.lane.b32.xlu1 %v1505_v28, %s1978_s2  ;;  %1506 = vst [vmem:[%s2454_s10] sm:$0xff] %v1505_v28 }
 0x65a   :  { %v1510_v3 = vpop.permute.xlu1 %1509 }
 0x65b   :  { %v1512_v31 = vsel %vm684_vm1, %v1096_v52, %v1510_v3  ;;  %v1513_v8 = vsel %vm684_vm1, %v1510_v3, %v1100_v51 }
 0x65c   :  { %v1514_v11 = vsel %vm1107_vm10, %v1513_v8, 0.0 }
 0x65d   :  { %v1761_v32 = vpack.c.bf16 %v1514_v11, %v1512_v31 }
 0x65f   :  { %1523 = vst [vmem:[%s2456_s12] sm:$0xff] %v1761_v32 }
 0x660   :  { %1536 = vsyncpa [#allocation5], 1 }
 0x661   :  { %1537 = vsyncmov [#allocation3] }
 0x664   :  { %s1538_s11 = vpop.sfrf %1537 }
 0x665   :  { %p1753_p5 = scmp.ne.s32.totalorder %s1538_s11, 0 }
 0x667   :  { %1542 = shalt.err (%p1753_p5)  }
 0x668   :  { %1544 = vsyncmov [#allocation3 + $0x1] }
 0x66b   :  { %s1545_s2 = vpop.sfrf %1544 }
 0x66c   :  { %p1754_p6 = scmp.ne.s32.totalorder %s1545_s2, 0 }
 0x66e   :  { %1549 = shalt.err (%p1754_p6)  }
 0x66f   :  { %1551 = vsyncmov [#allocation3 + $0x2] }
 0x672   :  { %s1552_s10 = vpop.sfrf %1551 }
 0x673   :  { %p1755_p7 = scmp.ne.s32.totalorder %s1552_s10, 0 }
 0x675   :  { %1556 = shalt.err (%p1755_p7)  }
 0x676   :  { %1558 = vsyncmov [#allocation3 + $0x3] }
 0x679   :  { %s1559_s20 = vpop.sfrf %1558 }
 0x67a   :  { %p1756_p8 = scmp.ne.s32.totalorder %s1559_s20, 0 }
 0x67c   :  { %1563 = shalt.err (%p1756_p8)  }
 0x67d   :  { %1565 = vsyncmov [#allocation3 + $0x4] }
 0x680   :  { %s1566_s29 = vpop.sfrf %1565 }
 0x681   :  { %p1757_p9 = scmp.ne.s32.totalorder %s1566_s29, 0 }
 0x683   :  { %1570 = shalt.err (%p1757_p9)  }
 0x684   :  { %1572 = vsyncmov [#allocation3 + $0x5] }
 0x687   :  { %s1573_s12 = vpop.sfrf %1572 }
 0x688   :  { %p1758_p10 = scmp.ne.s32.totalorder %s1573_s12, 0 }
 0x68a   :  { %1577 = shalt.err (%p1758_p10)  }
 0x68b   :  { %1579 = vsyncmov [#allocation3 + $0x6] }
 0x68e   :  { %s1580_s21 = vpop.sfrf %1579 }
 0x68f   :  { %p1759_p11 = scmp.ne.s32.totalorder %s1580_s21, 0 }
 0x691   :  { %1584 = shalt.err (%p1759_p11)  }
 0x692   :  { %1586 = vsyncmov [#allocation3 + $0x7] }
 0x695   :  { %s1587_s30 = vpop.sfrf %1586 }
 0x696   :  { %p1760_p12 = scmp.ne.s32.totalorder %s1587_s30, 0 }
 0x698   :  { %1591 = shalt.err (%p1760_p12)  }

</bundles_post_ra>
